<compile_context>
chip_gen: v5e
topology: v5e:2x2
jax: 0.10.0
libtpu: 0.0.40
codegen_flags: <defaults>
</compile_context>

<pallas_src>
import numpy as np
import jax
import jax.numpy as jnp
from jax.experimental import pallas as pl
from jax.experimental.pallas import tpu as pltpu

C = 6                 # input_dim (forced by Linear(96,256): 6 * 4*4 = 96)
H = W = 16            # spatial size (divisible by 4 so AdaptiveAvgPool2d(4) is a 4x4 mean)
HW = H * W            # 256 -> lane-dense
POOL = 4
NPOOL = POOL * POOL   # 16 pooled positions per channel
FEAT = C * NPOOL      # 96, matches Linear(96, 256)
HIDDEN = 256
OUT_DIM = 1
EPS = 1e-5            # BatchNorm eps
PAD = 32              # zero pad (lanes) on each side of the flattened spatial axis (>= W+1)
MAX_TILE = 8          # images folded into the sublane axis per grid step

# tap t = (dy+1)*3 + (dx+1), matching the OIHW kernel layout flattened over (ky, kx)
TAPS = [(dy, dx) for dy in (-1, 0, 1) for dx in (-1, 0, 1)]


# ----------------------------------------------------------------------------- kernel ---
def feature_tunk_kernel(x_ref, mask_ref, wbd1_ref, s1_ref, b1_ref,
                        wbd2_ref, s2_ref, b2_ref, ptw_ref, cmask_ref, ssum_ref,
                        fc1w_ref, fc1b_ref, fc2w_ref, fc2b_ref, out_ref, pad_ref):
    """Fused BasicBlock + AdaptiveAvgPool2d(4) + flatten + MLP head for one batch tile.

    Layout: x_ref is (Bt*C, HW) f32, rows ordered (image, channel) image-major and the
    HW=256 spatial positions lane-dense on the lane axis.  Each 3x3 conv is computed per
    tap as a static shifted-window read from a zero-padded staging buffer (boundary mask
    applied on the lane axis) followed by ONE block-diagonal channel-mix matmul covering
    the whole batch tile.  The pool + channel-major flatten are expressed as two small
    matmuls so no in-kernel reshape/transpose is needed.
    """
    x = x_ref[...]                                             # (Bt*C, HW)

    # Zero the staging buffer once per step; the pad strips stay zero for both convs and
    # give the h-direction zero padding for free (w-direction handled by the masks).
    pad_ref[...] = jnp.zeros(pad_ref.shape, jnp.float32)

    def conv3x3(wbd_ref):
        acc = None
        for t, (dy, dx) in enumerate(TAPS):
            start = PAD + dy * W + dx                          # static lane offset of tap
            g = pad_ref[:, start:start + HW]                   # (Bt*C, HW) shifted window
            if not (dy == 0 and dx == 0):
                g = g * mask_ref[t]                            # zero out-of-image pixels
            part = jnp.dot(wbd_ref[t], g, preferred_element_type=jnp.float32)
            acc = part if acc is None else acc + part
        return acc

    # conv1 -> BN1 (folded, inference) -> ReLU
    pad_ref[:, PAD:PAD + HW] = x
    h1 = jnp.maximum(conv3x3(wbd1_ref) * s1_ref[...] + b1_ref[...], 0.0)

    # conv2 -> BN2 -> + identity -> ReLU
    pad_ref[:, PAD:PAD + HW] = h1
    h2 = jnp.maximum(conv3x3(wbd2_ref) * s2_ref[...] + b2_ref[...] + x, 0.0)

    # AdaptiveAvgPool2d(4) + channel-major flatten as two matmuls (no in-kernel reshape):
    #   pooled_wide[(n,c), c'*16+r] = mean of 4x4 window r of row (n,c)
    #   flat[n, c*16+r]             = sum_c'' [c''==c] * pooled_wide[(n,c''), c*16+r]
    pooled_wide = jnp.dot(h2, ptw_ref[...], preferred_element_type=jnp.float32)   # (Bt*C, 96)
    flat = jnp.dot(ssum_ref[...], pooled_wide * cmask_ref[...],
                   preferred_element_type=jnp.float32)                            # (Bt, 96)

    # Linear(96,256) -> Hardswish -> Dropout(p=0.2) [identity at inference] -> Linear(256,1)
    hidden = jnp.dot(flat, fc1w_ref[...], preferred_element_type=jnp.float32) + fc1b_ref[...]
    hidden = hidden * jnp.clip(hidden + 3.0, 0.0, 6.0) * (1.0 / 6.0)               # Hardswish
    out_ref[...] = (jnp.dot(hidden, fc2w_ref[...], preferred_element_type=jnp.float32)
                    + fc2b_ref[...])


# ------------------------------------------------------------------------------- glue ---
def build_tap_masks():
    """mask[t, 0, h*W+w] = 1 iff input pixel (h+dy, w+dx) of tap t lies inside the image."""
    m = np.zeros((9, 1, HW), np.float32)
    for t, (dy, dx) in enumerate(TAPS):
        for h in range(H):
            for w in range(W):
                if 0 <= h + dy < H and 0 <= w + dx < W:
                    m[t, 0, h * W + w] = 1.0
    return jnp.asarray(m)


def build_pool_wide():
    """(HW, C*NPOOL) pooling matrix: column c*16+r averages 4x4 window r (same for all c)."""
    kh, kw = H // POOL, W // POOL
    pt = np.zeros((HW, NPOOL), np.float32)
    for h in range(H):
        for w in range(W):
            pt[h * W + w, (h // kh) * POOL + (w // kw)] = 1.0 / (kh * kw)
    return jnp.asarray(np.tile(pt, (1, C)))                     # (256, 96)


def build_tile_constants(params, bt):
    """Constants whose shape depends on the batch-tile size bt (rows = (image, channel))."""
    eye = jnp.eye(bt, dtype=jnp.float32)
    # block-diagonal channel-mix weights: wbd[t, n*C+co, m*C+ci] = [n==m] * w[t, co, ci]
    wbd1 = jnp.einsum("nm,tij->tnimj", eye, params["w1_taps"]).reshape(9, bt * C, bt * C)
    wbd2 = jnp.einsum("nm,tij->tnimj", eye, params["w2_taps"]).reshape(9, bt * C, bt * C)
    s1 = jnp.tile(params["bn1_scale"], bt).reshape(bt * C, 1)
    b1 = jnp.tile(params["bn1_bias"], bt).reshape(bt * C, 1)
    s2 = jnp.tile(params["bn2_scale"], bt).reshape(bt * C, 1)
    b2 = jnp.tile(params["bn2_bias"], bt).reshape(bt * C, 1)
    # channel-select mask for the flatten trick: row (n,c) keeps only lane block c
    base = np.zeros((C, FEAT), np.float32)
    for c in range(C):
        base[c, c * NPOOL:(c + 1) * NPOOL] = 1.0
    cmask = jnp.asarray(np.tile(base, (bt, 1)))                  # (bt*C, 96)
    # per-image row-sum matrix: ssum[n, n*C+c] = 1
    ssum = jnp.asarray(np.kron(np.eye(bt, dtype=np.float32),
                               np.ones((1, C), np.float32)))     # (bt, bt*C)
    return wbd1, wbd2, s1, b1, s2, b2, cmask, ssum


def make_params(key):
    k1, k2, k3, k4 = jax.random.split(key, 4)
    fan_out = C * 3 * 3
    std = (2.0 / fan_out) ** 0.5                                 # kaiming_normal_('fan_out')
    w1_oihw = jax.random.normal(k1, (C, C, 3, 3), jnp.float32) * std
    w2_oihw = jax.random.normal(k2, (C, C, 3, 3), jnp.float32) * std
    fc1_w = jax.random.normal(k3, (HIDDEN, FEAT), jnp.float32) * 0.01   # torch (out, in)
    fc1_b = jnp.zeros((HIDDEN,), jnp.float32)
    fc2_w = jax.random.normal(k4, (OUT_DIM, HIDDEN), jnp.float32) * 0.01
    fc2_b = jnp.zeros((OUT_DIM,), jnp.float32)

    # BatchNorm folded (inference, fresh stats): scale = 1/sqrt(1+eps), bias = 0
    bn_scale = jnp.full((C,), 1.0 / np.sqrt(1.0 + EPS), jnp.float32)
    bn_bias = jnp.zeros((C,), jnp.float32)

    return dict(
        # torch-layout copies (for the pure-JAX reference)
        w1_oihw=w1_oihw, w2_oihw=w2_oihw,
        fc1_w_torch=fc1_w, fc1_b_torch=fc1_b, fc2_w_torch=fc2_w, fc2_b_torch=fc2_b,
        # kernel-layout copies
        w1_taps=jnp.transpose(w1_oihw, (2, 3, 0, 1)).reshape(9, C, C),  # [tap, Cout, Cin]
        w2_taps=jnp.transpose(w2_oihw, (2, 3, 0, 1)).reshape(9, C, C),
        bn1_scale=bn_scale, bn1_bias=bn_bias, bn2_scale=bn_scale, bn2_bias=bn_bias,
        fc1_w=fc1_w.T, fc1_b=fc1_b.reshape(1, HIDDEN),
        fc2_w=fc2_w.T, fc2_b=fc2_b.reshape(1, OUT_DIM),
    )


def feature_tunk_forward(x_nchw, params):
    n = x_nchw.shape[0]
    # Batch-tile selection: fold MAX_TILE images into the sublane axis per grid step;
    # small batches (< MAX_TILE) run as a single full-block step, larger batches are
    # zero-padded up to a multiple of MAX_TILE (padded rows are sliced off afterwards).
    if n >= MAX_TILE:
        bt, n_pad = MAX_TILE, (-n) % MAX_TILE
    else:
        bt, n_pad = n, 0
    if n_pad:
        x_nchw = jnp.concatenate(
            [x_nchw, jnp.zeros((n_pad,) + x_nchw.shape[1:], x_nchw.dtype)], axis=0)
    n_total = n + n_pad

    x2 = x_nchw.reshape(n_total * C, HW)        # NCHW -> (N*C, HW): free reshape, lanes = HW

    masks = build_tap_masks()
    ptwide = build_pool_wide()
    wbd1, wbd2, s1, b1, s2, b2, cmask, ssum = build_tile_constants(params, bt)

    def cspec(shape):                            # constant operand: one full-array block
        nd = len(shape)
        return pl.BlockSpec(shape, lambda i, _nd=nd: (0,) * _nd)

    out = pl.pallas_call(
        feature_tunk_kernel,
        out_shape=jax.ShapeDtypeStruct((n_total, OUT_DIM), jnp.float32),
        grid=(n_total // bt,),
        in_specs=[
            pl.BlockSpec((bt * C, HW), lambda i: (i, 0)),   # input tile (image,channel) rows
            cspec((9, 1, HW)),                              # 3x3 tap boundary masks
            cspec((9, bt * C, bt * C)),                     # conv1 block-diag channel mix
            cspec((bt * C, 1)), cspec((bt * C, 1)),         # bn1 scale / bias (folded)
            cspec((9, bt * C, bt * C)),                     # conv2 block-diag channel mix
            cspec((bt * C, 1)), cspec((bt * C, 1)),         # bn2 scale / bias (folded)
            cspec((HW, FEAT)),                              # pooling matrix (tiled wide)
            cspec((bt * C, FEAT)),                          # channel-select mask
            cspec((bt, bt * C)),                            # per-image row-sum matrix
            cspec((FEAT, HIDDEN)), cspec((1, HIDDEN)),      # fc1 weight / bias
            cspec((HIDDEN, OUT_DIM)), cspec((1, OUT_DIM)),  # fc2 weight / bias
        ],
        out_specs=pl.BlockSpec((bt, OUT_DIM), lambda i: (i, 0)),
        scratch_shapes=[pltpu.VMEM((bt * C, HW + 2 * PAD), jnp.float32)],
        compiler_params=pltpu.CompilerParams(dimension_semantics=("parallel",)),
    )(x2, masks, wbd1, s1, b1, wbd2, s2, b2, ptwide, cmask, ssum,
      params["fc1_w"], params["fc1_b"], params["fc2_w"], params["fc2_b"])

    return out[:n] if n_pad else out


# -------------------------------------------------------------------------- reference ---
def reference_forward(x, p):
    dn = ("NCHW", "OIHW", "NCHW")
    s1, b1 = p["bn1_scale"], p["bn1_bias"]
    s2, b2 = p["bn2_scale"], p["bn2_bias"]
    y = jax.lax.conv_general_dilated(x, p["w1_oihw"], (1, 1), ((1, 1), (1, 1)),
                                     dimension_numbers=dn)
    y = jnp.maximum(y * s1[None, :, None, None] + b1[None, :, None, None], 0.0)
    y = jax.lax.conv_general_dilated(y, p["w2_oihw"], (1, 1), ((1, 1), (1, 1)),
                                     dimension_numbers=dn)
    y = y * s2[None, :, None, None] + b2[None, :, None, None]
    y = jnp.maximum(y + x, 0.0)
    n = x.shape[0]
    y = y.reshape(n, C, POOL, H // POOL, POOL, W // POOL).mean(axis=(3, 5))  # AdaptiveAvgPool2d(4)
    flat = y.reshape(n, FEAT)
    h = flat @ p["fc1_w_torch"].T + p["fc1_b_torch"]
    h = h * jnp.clip(h + 3.0, 0.0, 6.0) / 6.0
    return h @ p["fc2_w_torch"].T + p["fc2_b_torch"]


if __name__ == "__main__":
    key = jax.random.PRNGKey(0)
    kp, kx = jax.random.split(key)
    params = make_params(kp)

    N = 2
    x = jax.random.normal(kx, (N, C, H, W), jnp.float32)   # PyTorch NCHW input

    out = feature_tunk_forward(x, params)
    out = jax.block_until_ready(out)

    ref = reference_forward(x, params)
    assert out.shape == (N, OUT_DIM)
    np.testing.assert_allclose(np.asarray(out), np.asarray(ref), rtol=5e-2, atol=1e-3)
    print("KERNEL_OK")
</pallas_src>

<mosaic_0001>
module attributes {stable_mosaic.version = 11 : i64} {
  func.func @feature_tunk_kernel(%arg0: i32, %arg1: memref<12x256xf32, #tpu.memory_space<vmem>>, %arg2: memref<9x1x256xf32, #tpu.memory_space<vmem>>, %arg3: memref<9x12x12xf32, #tpu.memory_space<vmem>>, %arg4: memref<12x1xf32, #tpu.memory_space<vmem>>, %arg5: memref<12x1xf32, #tpu.memory_space<vmem>>, %arg6: memref<9x12x12xf32, #tpu.memory_space<vmem>>, %arg7: memref<12x1xf32, #tpu.memory_space<vmem>>, %arg8: memref<12x1xf32, #tpu.memory_space<vmem>>, %arg9: memref<256x96xf32, #tpu.memory_space<vmem>>, %arg10: memref<12x96xf32, #tpu.memory_space<vmem>>, %arg11: memref<2x12xf32, #tpu.memory_space<vmem>>, %arg12: memref<96x256xf32, #tpu.memory_space<vmem>>, %arg13: memref<1x256xf32, #tpu.memory_space<vmem>>, %arg14: memref<256x1xf32, #tpu.memory_space<vmem>>, %arg15: memref<1x1xf32, #tpu.memory_space<vmem>>, %arg16: memref<2x1xf32, #tpu.memory_space<vmem>>, %arg17: memref<12x320xf32, #tpu.memory_space<vmem>>) attributes {dimension_semantics = [#tpu.dimension_semantics<parallel>], iteration_bounds = array<i64: 1>, scalar_prefetch = 0 : i64, scratch_operands = 1 : i64, tpu.core_type = #tpu.core_type<tc>, window_params = [{transform_indices = @transform_0, window_bounds = array<i64: 12, 256>}, {pipeline_mode = #tpu.pipeline_mode<synchronous>, transform_indices = @transform_1, window_bounds = array<i64: 9, 1, 256>}, {pipeline_mode = #tpu.pipeline_mode<synchronous>, transform_indices = @transform_2, window_bounds = array<i64: 9, 12, 12>}, {pipeline_mode = #tpu.pipeline_mode<synchronous>, transform_indices = @transform_3, window_bounds = array<i64: 12, 1>}, {pipeline_mode = #tpu.pipeline_mode<synchronous>, transform_indices = @transform_4, window_bounds = array<i64: 12, 1>}, {pipeline_mode = #tpu.pipeline_mode<synchronous>, transform_indices = @transform_5, window_bounds = array<i64: 9, 12, 12>}, {pipeline_mode = #tpu.pipeline_mode<synchronous>, transform_indices = @transform_6, window_bounds = array<i64: 12, 1>}, {pipeline_mode = #tpu.pipeline_mode<synchronous>, transform_indices = @transform_7, window_bounds = array<i64: 12, 1>}, {pipeline_mode = #tpu.pipeline_mode<synchronous>, transform_indices = @transform_8, window_bounds = array<i64: 256, 96>}, {pipeline_mode = #tpu.pipeline_mode<synchronous>, transform_indices = @transform_9, window_bounds = array<i64: 12, 96>}, {pipeline_mode = #tpu.pipeline_mode<synchronous>, transform_indices = @transform_10, window_bounds = array<i64: 2, 12>}, {pipeline_mode = #tpu.pipeline_mode<synchronous>, transform_indices = @transform_11, window_bounds = array<i64: 96, 256>}, {pipeline_mode = #tpu.pipeline_mode<synchronous>, transform_indices = @transform_12, window_bounds = array<i64: 1, 256>}, {pipeline_mode = #tpu.pipeline_mode<synchronous>, transform_indices = @transform_13, window_bounds = array<i64: 256, 1>}, {pipeline_mode = #tpu.pipeline_mode<synchronous>, transform_indices = @transform_14, window_bounds = array<i64: 1, 1>}, {transform_indices = @transform_15, window_bounds = array<i64: 2, 1>}]} {
    %c0 = arith.constant 0 : index
    %c0_0 = arith.constant 0 : index
    %0 = vector.load %arg1[%c0, %c0_0] : memref<12x256xf32, #tpu.memory_space<vmem>>, vector<12x256xf32>
    %cst = arith.constant 0.000000e+00 : f32
    %1 = vector.broadcast %cst : f32 to vector<12x320xf32>
    %c0_1 = arith.constant 0 : index
    %c0_2 = arith.constant 0 : index
    %2 = vector.load %arg17[%c0_1, %c0_2] : memref<12x320xf32, #tpu.memory_space<vmem>>, vector<12x320xf32>
    tpu.vector_store %arg17[%c0_1, %c0_2], %1 {strides = array<i32>} : memref<12x320xf32, #tpu.memory_space<vmem>>, vector<12x320xf32>,
    %c0_3 = arith.constant 0 : index
    %c32 = arith.constant 32 : index
    %3 = vector.load %arg17[%c0_3, %c32] : memref<12x320xf32, #tpu.memory_space<vmem>>, vector<12x256xf32>
    tpu.vector_store %arg17[%c0_3, %c32], %0 {strides = array<i32>} : memref<12x320xf32, #tpu.memory_space<vmem>>, vector<12x256xf32>,
    %c0_4 = arith.constant 0 : index
    %c15 = arith.constant 15 : index
    %4 = vector.load %arg17[%c0_4, %c15] : memref<12x320xf32, #tpu.memory_space<vmem>>, vector<12x256xf32>
    %c0_5 = arith.constant 0 : index
    %c0_6 = arith.constant 0 : index
    %c0_7 = arith.constant 0 : index
    %5 = vector.load %arg2[%c0_5, %c0_6, %c0_7] : memref<9x1x256xf32, #tpu.memory_space<vmem>>, vector<1x1x256xf32>
    %6 = vector.shape_cast %5 : vector<1x1x256xf32> to vector<1x256xf32>
    %7 = vector.broadcast %6 : vector<1x256xf32> to vector<12x256xf32>
    %8 = arith.mulf %4, %7 : vector<12x256xf32>
    %c0_8 = arith.constant 0 : index
    %c0_9 = arith.constant 0 : index
    %c0_10 = arith.constant 0 : index
    %9 = vector.load %arg3[%c0_8, %c0_9, %c0_10] : memref<9x12x12xf32, #tpu.memory_space<vmem>>, vector<1x12x12xf32>
    %10 = vector.shape_cast %9 : vector<1x12x12xf32> to vector<12x12xf32>
    %cst_11 = arith.constant dense<0.000000e+00> : vector<12x256xf32>
    %11 = tpu.matmul %10, %8, %cst_11 {dimension_numbers = #tpu.dot_dimension_numbers<[1], [0], [0], [1], [0, 0, 1, 1], [], []>} : vector<12x12xf32>, vector<12x256xf32>, vector<12x256xf32> -> vector<12x256xf32>
    %c0_12 = arith.constant 0 : index
    %c16 = arith.constant 16 : index
    %12 = vector.load %arg17[%c0_12, %c16] : memref<12x320xf32, #tpu.memory_space<vmem>>, vector<12x256xf32>
    %c1 = arith.constant 1 : index
    %c0_13 = arith.constant 0 : index
    %c0_14 = arith.constant 0 : index
    %13 = vector.load %arg2[%c1, %c0_13, %c0_14] : memref<9x1x256xf32, #tpu.memory_space<vmem>>, vector<1x1x256xf32>
    %14 = vector.shape_cast %13 : vector<1x1x256xf32> to vector<1x256xf32>
    %15 = vector.broadcast %14 : vector<1x256xf32> to vector<12x256xf32>
    %16 = arith.mulf %12, %15 : vector<12x256xf32>
    %c1_15 = arith.constant 1 : index
    %c0_16 = arith.constant 0 : index
    %c0_17 = arith.constant 0 : index
    %17 = vector.load %arg3[%c1_15, %c0_16, %c0_17] : memref<9x12x12xf32, #tpu.memory_space<vmem>>, vector<1x12x12xf32>
    %18 = vector.shape_cast %17 : vector<1x12x12xf32> to vector<12x12xf32>
    %cst_18 = arith.constant dense<0.000000e+00> : vector<12x256xf32>
    %19 = tpu.matmul %18, %16, %cst_18 {dimension_numbers = #tpu.dot_dimension_numbers<[1], [0], [0], [1], [0, 0, 1, 1], [], []>} : vector<12x12xf32>, vector<12x256xf32>, vector<12x256xf32> -> vector<12x256xf32>
    %20 = arith.addf %11, %19 : vector<12x256xf32>
    %c0_19 = arith.constant 0 : index
    %c17 = arith.constant 17 : index
    %21 = vector.load %arg17[%c0_19, %c17] : memref<12x320xf32, #tpu.memory_space<vmem>>, vector<12x256xf32>
    %c2 = arith.constant 2 : index
    %c0_20 = arith.constant 0 : index
    %c0_21 = arith.constant 0 : index
    %22 = vector.load %arg2[%c2, %c0_20, %c0_21] : memref<9x1x256xf32, #tpu.memory_space<vmem>>, vector<1x1x256xf32>
    %23 = vector.shape_cast %22 : vector<1x1x256xf32> to vector<1x256xf32>
    %24 = vector.broadcast %23 : vector<1x256xf32> to vector<12x256xf32>
    %25 = arith.mulf %21, %24 : vector<12x256xf32>
    %c2_22 = arith.constant 2 : index
    %c0_23 = arith.constant 0 : index
    %c0_24 = arith.constant 0 : index
    %26 = vector.load %arg3[%c2_22, %c0_23, %c0_24] : memref<9x12x12xf32, #tpu.memory_space<vmem>>, vector<1x12x12xf32>
    %27 = vector.shape_cast %26 : vector<1x12x12xf32> to vector<12x12xf32>
    %cst_25 = arith.constant dense<0.000000e+00> : vector<12x256xf32>
    %28 = tpu.matmul %27, %25, %cst_25 {dimension_numbers = #tpu.dot_dimension_numbers<[1], [0], [0], [1], [0, 0, 1, 1], [], []>} : vector<12x12xf32>, vector<12x256xf32>, vector<12x256xf32> -> vector<12x256xf32>
    %29 = arith.addf %20, %28 : vector<12x256xf32>
    %c0_26 = arith.constant 0 : index
    %c31 = arith.constant 31 : index
    %30 = vector.load %arg17[%c0_26, %c31] : memref<12x320xf32, #tpu.memory_space<vmem>>, vector<12x256xf32>
    %c3 = arith.constant 3 : index
    %c0_27 = arith.constant 0 : index
    %c0_28 = arith.constant 0 : index
    %31 = vector.load %arg2[%c3, %c0_27, %c0_28] : memref<9x1x256xf32, #tpu.memory_space<vmem>>, vector<1x1x256xf32>
    %32 = vector.shape_cast %31 : vector<1x1x256xf32> to vector<1x256xf32>
    %33 = vector.broadcast %32 : vector<1x256xf32> to vector<12x256xf32>
    %34 = arith.mulf %30, %33 : vector<12x256xf32>
    %c3_29 = arith.constant 3 : index
    %c0_30 = arith.constant 0 : index
    %c0_31 = arith.constant 0 : index
    %35 = vector.load %arg3[%c3_29, %c0_30, %c0_31] : memref<9x12x12xf32, #tpu.memory_space<vmem>>, vector<1x12x12xf32>
    %36 = vector.shape_cast %35 : vector<1x12x12xf32> to vector<12x12xf32>
    %cst_32 = arith.constant dense<0.000000e+00> : vector<12x256xf32>
    %37 = tpu.matmul %36, %34, %cst_32 {dimension_numbers = #tpu.dot_dimension_numbers<[1], [0], [0], [1], [0, 0, 1, 1], [], []>} : vector<12x12xf32>, vector<12x256xf32>, vector<12x256xf32> -> vector<12x256xf32>
    %38 = arith.addf %29, %37 : vector<12x256xf32>
    %c0_33 = arith.constant 0 : index
    %c32_34 = arith.constant 32 : index
    %39 = vector.load %arg17[%c0_33, %c32_34] : memref<12x320xf32, #tpu.memory_space<vmem>>, vector<12x256xf32>
    %c4 = arith.constant 4 : index
    %c0_35 = arith.constant 0 : index
    %c0_36 = arith.constant 0 : index
    %40 = vector.load %arg3[%c4, %c0_35, %c0_36] : memref<9x12x12xf32, #tpu.memory_space<vmem>>, vector<1x12x12xf32>
    %41 = vector.shape_cast %40 : vector<1x12x12xf32> to vector<12x12xf32>
    %cst_37 = arith.constant dense<0.000000e+00> : vector<12x256xf32>
    %42 = tpu.matmul %41, %39, %cst_37 {dimension_numbers = #tpu.dot_dimension_numbers<[1], [0], [0], [1], [0, 0, 1, 1], [], []>} : vector<12x12xf32>, vector<12x256xf32>, vector<12x256xf32> -> vector<12x256xf32>
    %43 = arith.addf %38, %42 : vector<12x256xf32>
    %c0_38 = arith.constant 0 : index
    %c33 = arith.constant 33 : index
    %44 = vector.load %arg17[%c0_38, %c33] : memref<12x320xf32, #tpu.memory_space<vmem>>, vector<12x256xf32>
    %c5 = arith.constant 5 : index
    %c0_39 = arith.constant 0 : index
    %c0_40 = arith.constant 0 : index
    %45 = vector.load %arg2[%c5, %c0_39, %c0_40] : memref<9x1x256xf32, #tpu.memory_space<vmem>>, vector<1x1x256xf32>
    %46 = vector.shape_cast %45 : vector<1x1x256xf32> to vector<1x256xf32>
    %47 = vector.broadcast %46 : vector<1x256xf32> to vector<12x256xf32>
    %48 = arith.mulf %44, %47 : vector<12x256xf32>
    %c5_41 = arith.constant 5 : index
    %c0_42 = arith.constant 0 : index
    %c0_43 = arith.constant 0 : index
    %49 = vector.load %arg3[%c5_41, %c0_42, %c0_43] : memref<9x12x12xf32, #tpu.memory_space<vmem>>, vector<1x12x12xf32>
    %50 = vector.shape_cast %49 : vector<1x12x12xf32> to vector<12x12xf32>
    %cst_44 = arith.constant dense<0.000000e+00> : vector<12x256xf32>
    %51 = tpu.matmul %50, %48, %cst_44 {dimension_numbers = #tpu.dot_dimension_numbers<[1], [0], [0], [1], [0, 0, 1, 1], [], []>} : vector<12x12xf32>, vector<12x256xf32>, vector<12x256xf32> -> vector<12x256xf32>
    %52 = arith.addf %43, %51 : vector<12x256xf32>
    %c0_45 = arith.constant 0 : index
    %c47 = arith.constant 47 : index
    %53 = vector.load %arg17[%c0_45, %c47] : memref<12x320xf32, #tpu.memory_space<vmem>>, vector<12x256xf32>
    %c6 = arith.constant 6 : index
    %c0_46 = arith.constant 0 : index
    %c0_47 = arith.constant 0 : index
    %54 = vector.load %arg2[%c6, %c0_46, %c0_47] : memref<9x1x256xf32, #tpu.memory_space<vmem>>, vector<1x1x256xf32>
    %55 = vector.shape_cast %54 : vector<1x1x256xf32> to vector<1x256xf32>
    %56 = vector.broadcast %55 : vector<1x256xf32> to vector<12x256xf32>
    %57 = arith.mulf %53, %56 : vector<12x256xf32>
    %c6_48 = arith.constant 6 : index
    %c0_49 = arith.constant 0 : index
    %c0_50 = arith.constant 0 : index
    %58 = vector.load %arg3[%c6_48, %c0_49, %c0_50] : memref<9x12x12xf32, #tpu.memory_space<vmem>>, vector<1x12x12xf32>
    %59 = vector.shape_cast %58 : vector<1x12x12xf32> to vector<12x12xf32>
    %cst_51 = arith.constant dense<0.000000e+00> : vector<12x256xf32>
    %60 = tpu.matmul %59, %57, %cst_51 {dimension_numbers = #tpu.dot_dimension_numbers<[1], [0], [0], [1], [0, 0, 1, 1], [], []>} : vector<12x12xf32>, vector<12x256xf32>, vector<12x256xf32> -> vector<12x256xf32>
    %61 = arith.addf %52, %60 : vector<12x256xf32>
    %c0_52 = arith.constant 0 : index
    %c48 = arith.constant 48 : index
    %62 = vector.load %arg17[%c0_52, %c48] : memref<12x320xf32, #tpu.memory_space<vmem>>, vector<12x256xf32>
    %c7 = arith.constant 7 : index
    %c0_53 = arith.constant 0 : index
    %c0_54 = arith.constant 0 : index
    %63 = vector.load %arg2[%c7, %c0_53, %c0_54] : memref<9x1x256xf32, #tpu.memory_space<vmem>>, vector<1x1x256xf32>
    %64 = vector.shape_cast %63 : vector<1x1x256xf32> to vector<1x256xf32>
    %65 = vector.broadcast %64 : vector<1x256xf32> to vector<12x256xf32>
    %66 = arith.mulf %62, %65 : vector<12x256xf32>
    %c7_55 = arith.constant 7 : index
    %c0_56 = arith.constant 0 : index
    %c0_57 = arith.constant 0 : index
    %67 = vector.load %arg3[%c7_55, %c0_56, %c0_57] : memref<9x12x12xf32, #tpu.memory_space<vmem>>, vector<1x12x12xf32>
    %68 = vector.shape_cast %67 : vector<1x12x12xf32> to vector<12x12xf32>
    %cst_58 = arith.constant dense<0.000000e+00> : vector<12x256xf32>
    %69 = tpu.matmul %68, %66, %cst_58 {dimension_numbers = #tpu.dot_dimension_numbers<[1], [0], [0], [1], [0, 0, 1, 1], [], []>} : vector<12x12xf32>, vector<12x256xf32>, vector<12x256xf32> -> vector<12x256xf32>
    %70 = arith.addf %61, %69 : vector<12x256xf32>
    %c0_59 = arith.constant 0 : index
    %c49 = arith.constant 49 : index
    %71 = vector.load %arg17[%c0_59, %c49] : memref<12x320xf32, #tpu.memory_space<vmem>>, vector<12x256xf32>
    %c8 = arith.constant 8 : index
    %c0_60 = arith.constant 0 : index
    %c0_61 = arith.constant 0 : index
    %72 = vector.load %arg2[%c8, %c0_60, %c0_61] : memref<9x1x256xf32, #tpu.memory_space<vmem>>, vector<1x1x256xf32>
    %73 = vector.shape_cast %72 : vector<1x1x256xf32> to vector<1x256xf32>
    %74 = vector.broadcast %73 : vector<1x256xf32> to vector<12x256xf32>
    %75 = arith.mulf %71, %74 : vector<12x256xf32>
    %c8_62 = arith.constant 8 : index
    %c0_63 = arith.constant 0 : index
    %c0_64 = arith.constant 0 : index
    %76 = vector.load %arg3[%c8_62, %c0_63, %c0_64] : memref<9x12x12xf32, #tpu.memory_space<vmem>>, vector<1x12x12xf32>
    %77 = vector.shape_cast %76 : vector<1x12x12xf32> to vector<12x12xf32>
    %cst_65 = arith.constant dense<0.000000e+00> : vector<12x256xf32>
    %78 = tpu.matmul %77, %75, %cst_65 {dimension_numbers = #tpu.dot_dimension_numbers<[1], [0], [0], [1], [0, 0, 1, 1], [], []>} : vector<12x12xf32>, vector<12x256xf32>, vector<12x256xf32> -> vector<12x256xf32>
    %79 = arith.addf %70, %78 : vector<12x256xf32>
    %c0_66 = arith.constant 0 : index
    %c0_67 = arith.constant 0 : index
    %80 = vector.load %arg4[%c0_66, %c0_67] : memref<12x1xf32, #tpu.memory_space<vmem>>, vector<12x1xf32>
    %81 = vector.broadcast %80 : vector<12x1xf32> to vector<12x256xf32>
    %82 = arith.mulf %79, %81 : vector<12x256xf32>
    %c0_68 = arith.constant 0 : index
    %c0_69 = arith.constant 0 : index
    %83 = vector.load %arg5[%c0_68, %c0_69] : memref<12x1xf32, #tpu.memory_space<vmem>>, vector<12x1xf32>
    %84 = vector.broadcast %83 : vector<12x1xf32> to vector<12x256xf32>
    %85 = arith.addf %82, %84 : vector<12x256xf32>
    %cst_70 = arith.constant 0.000000e+00 : f32
    %86 = vector.broadcast %cst_70 : f32 to vector<12x256xf32>
    %87 = arith.maximumf %85, %86 : vector<12x256xf32>
    %c0_71 = arith.constant 0 : index
    %c32_72 = arith.constant 32 : index
    %88 = vector.load %arg17[%c0_71, %c32_72] : memref<12x320xf32, #tpu.memory_space<vmem>>, vector<12x256xf32>
    tpu.vector_store %arg17[%c0_71, %c32_72], %87 {strides = array<i32>} : memref<12x320xf32, #tpu.memory_space<vmem>>, vector<12x256xf32>,
    %c0_73 = arith.constant 0 : index
    %c15_74 = arith.constant 15 : index
    %89 = vector.load %arg17[%c0_73, %c15_74] : memref<12x320xf32, #tpu.memory_space<vmem>>, vector<12x256xf32>
    %c0_75 = arith.constant 0 : index
    %c0_76 = arith.constant 0 : index
    %c0_77 = arith.constant 0 : index
    %90 = vector.load %arg2[%c0_75, %c0_76, %c0_77] : memref<9x1x256xf32, #tpu.memory_space<vmem>>, vector<1x1x256xf32>
    %91 = vector.shape_cast %90 : vector<1x1x256xf32> to vector<1x256xf32>
    %92 = vector.broadcast %91 : vector<1x256xf32> to vector<12x256xf32>
    %93 = arith.mulf %89, %92 : vector<12x256xf32>
    %c0_78 = arith.constant 0 : index
    %c0_79 = arith.constant 0 : index
    %c0_80 = arith.constant 0 : index
    %94 = vector.load %arg6[%c0_78, %c0_79, %c0_80] : memref<9x12x12xf32, #tpu.memory_space<vmem>>, vector<1x12x12xf32>
    %95 = vector.shape_cast %94 : vector<1x12x12xf32> to vector<12x12xf32>
    %cst_81 = arith.constant dense<0.000000e+00> : vector<12x256xf32>
    %96 = tpu.matmul %95, %93, %cst_81 {dimension_numbers = #tpu.dot_dimension_numbers<[1], [0], [0], [1], [0, 0, 1, 1], [], []>} : vector<12x12xf32>, vector<12x256xf32>, vector<12x256xf32> -> vector<12x256xf32>
    %c0_82 = arith.constant 0 : index
    %c16_83 = arith.constant 16 : index
    %97 = vector.load %arg17[%c0_82, %c16_83] : memref<12x320xf32, #tpu.memory_space<vmem>>, vector<12x256xf32>
    %c1_84 = arith.constant 1 : index
    %c0_85 = arith.constant 0 : index
    %c0_86 = arith.constant 0 : index
    %98 = vector.load %arg2[%c1_84, %c0_85, %c0_86] : memref<9x1x256xf32, #tpu.memory_space<vmem>>, vector<1x1x256xf32>
    %99 = vector.shape_cast %98 : vector<1x1x256xf32> to vector<1x256xf32>
    %100 = vector.broadcast %99 : vector<1x256xf32> to vector<12x256xf32>
    %101 = arith.mulf %97, %100 : vector<12x256xf32>
    %c1_87 = arith.constant 1 : index
    %c0_88 = arith.constant 0 : index
    %c0_89 = arith.constant 0 : index
    %102 = vector.load %arg6[%c1_87, %c0_88, %c0_89] : memref<9x12x12xf32, #tpu.memory_space<vmem>>, vector<1x12x12xf32>
    %103 = vector.shape_cast %102 : vector<1x12x12xf32> to vector<12x12xf32>
    %cst_90 = arith.constant dense<0.000000e+00> : vector<12x256xf32>
    %104 = tpu.matmul %103, %101, %cst_90 {dimension_numbers = #tpu.dot_dimension_numbers<[1], [0], [0], [1], [0, 0, 1, 1], [], []>} : vector<12x12xf32>, vector<12x256xf32>, vector<12x256xf32> -> vector<12x256xf32>
    %105 = arith.addf %96, %104 : vector<12x256xf32>
    %c0_91 = arith.constant 0 : index
    %c17_92 = arith.constant 17 : index
    %106 = vector.load %arg17[%c0_91, %c17_92] : memref<12x320xf32, #tpu.memory_space<vmem>>, vector<12x256xf32>
    %c2_93 = arith.constant 2 : index
    %c0_94 = arith.constant 0 : index
    %c0_95 = arith.constant 0 : index
    %107 = vector.load %arg2[%c2_93, %c0_94, %c0_95] : memref<9x1x256xf32, #tpu.memory_space<vmem>>, vector<1x1x256xf32>
    %108 = vector.shape_cast %107 : vector<1x1x256xf32> to vector<1x256xf32>
    %109 = vector.broadcast %108 : vector<1x256xf32> to vector<12x256xf32>
    %110 = arith.mulf %106, %109 : vector<12x256xf32>
    %c2_96 = arith.constant 2 : index
    %c0_97 = arith.constant 0 : index
    %c0_98 = arith.constant 0 : index
    %111 = vector.load %arg6[%c2_96, %c0_97, %c0_98] : memref<9x12x12xf32, #tpu.memory_space<vmem>>, vector<1x12x12xf32>
    %112 = vector.shape_cast %111 : vector<1x12x12xf32> to vector<12x12xf32>
    %cst_99 = arith.constant dense<0.000000e+00> : vector<12x256xf32>
    %113 = tpu.matmul %112, %110, %cst_99 {dimension_numbers = #tpu.dot_dimension_numbers<[1], [0], [0], [1], [0, 0, 1, 1], [], []>} : vector<12x12xf32>, vector<12x256xf32>, vector<12x256xf32> -> vector<12x256xf32>
    %114 = arith.addf %105, %113 : vector<12x256xf32>
    %c0_100 = arith.constant 0 : index
    %c31_101 = arith.constant 31 : index
    %115 = vector.load %arg17[%c0_100, %c31_101] : memref<12x320xf32, #tpu.memory_space<vmem>>, vector<12x256xf32>
    %c3_102 = arith.constant 3 : index
    %c0_103 = arith.constant 0 : index
    %c0_104 = arith.constant 0 : index
    %116 = vector.load %arg2[%c3_102, %c0_103, %c0_104] : memref<9x1x256xf32, #tpu.memory_space<vmem>>, vector<1x1x256xf32>
    %117 = vector.shape_cast %116 : vector<1x1x256xf32> to vector<1x256xf32>
    %118 = vector.broadcast %117 : vector<1x256xf32> to vector<12x256xf32>
    %119 = arith.mulf %115, %118 : vector<12x256xf32>
    %c3_105 = arith.constant 3 : index
    %c0_106 = arith.constant 0 : index
    %c0_107 = arith.constant 0 : index
    %120 = vector.load %arg6[%c3_105, %c0_106, %c0_107] : memref<9x12x12xf32, #tpu.memory_space<vmem>>, vector<1x12x12xf32>
    %121 = vector.shape_cast %120 : vector<1x12x12xf32> to vector<12x12xf32>
    %cst_108 = arith.constant dense<0.000000e+00> : vector<12x256xf32>
    %122 = tpu.matmul %121, %119, %cst_108 {dimension_numbers = #tpu.dot_dimension_numbers<[1], [0], [0], [1], [0, 0, 1, 1], [], []>} : vector<12x12xf32>, vector<12x256xf32>, vector<12x256xf32> -> vector<12x256xf32>
    %123 = arith.addf %114, %122 : vector<12x256xf32>
    %c0_109 = arith.constant 0 : index
    %c32_110 = arith.constant 32 : index
    %124 = vector.load %arg17[%c0_109, %c32_110] : memref<12x320xf32, #tpu.memory_space<vmem>>, vector<12x256xf32>
    %c4_111 = arith.constant 4 : index
    %c0_112 = arith.constant 0 : index
    %c0_113 = arith.constant 0 : index
    %125 = vector.load %arg6[%c4_111, %c0_112, %c0_113] : memref<9x12x12xf32, #tpu.memory_space<vmem>>, vector<1x12x12xf32>
    %126 = vector.shape_cast %125 : vector<1x12x12xf32> to vector<12x12xf32>
    %cst_114 = arith.constant dense<0.000000e+00> : vector<12x256xf32>
    %127 = tpu.matmul %126, %124, %cst_114 {dimension_numbers = #tpu.dot_dimension_numbers<[1], [0], [0], [1], [0, 0, 1, 1], [], []>} : vector<12x12xf32>, vector<12x256xf32>, vector<12x256xf32> -> vector<12x256xf32>
    %128 = arith.addf %123, %127 : vector<12x256xf32>
    %c0_115 = arith.constant 0 : index
    %c33_116 = arith.constant 33 : index
    %129 = vector.load %arg17[%c0_115, %c33_116] : memref<12x320xf32, #tpu.memory_space<vmem>>, vector<12x256xf32>
    %c5_117 = arith.constant 5 : index
    %c0_118 = arith.constant 0 : index
    %c0_119 = arith.constant 0 : index
    %130 = vector.load %arg2[%c5_117, %c0_118, %c0_119] : memref<9x1x256xf32, #tpu.memory_space<vmem>>, vector<1x1x256xf32>
    %131 = vector.shape_cast %130 : vector<1x1x256xf32> to vector<1x256xf32>
    %132 = vector.broadcast %131 : vector<1x256xf32> to vector<12x256xf32>
    %133 = arith.mulf %129, %132 : vector<12x256xf32>
    %c5_120 = arith.constant 5 : index
    %c0_121 = arith.constant 0 : index
    %c0_122 = arith.constant 0 : index
    %134 = vector.load %arg6[%c5_120, %c0_121, %c0_122] : memref<9x12x12xf32, #tpu.memory_space<vmem>>, vector<1x12x12xf32>
    %135 = vector.shape_cast %134 : vector<1x12x12xf32> to vector<12x12xf32>
    %cst_123 = arith.constant dense<0.000000e+00> : vector<12x256xf32>
    %136 = tpu.matmul %135, %133, %cst_123 {dimension_numbers = #tpu.dot_dimension_numbers<[1], [0], [0], [1], [0, 0, 1, 1], [], []>} : vector<12x12xf32>, vector<12x256xf32>, vector<12x256xf32> -> vector<12x256xf32>
    %137 = arith.addf %128, %136 : vector<12x256xf32>
    %c0_124 = arith.constant 0 : index
    %c47_125 = arith.constant 47 : index
    %138 = vector.load %arg17[%c0_124, %c47_125] : memref<12x320xf32, #tpu.memory_space<vmem>>, vector<12x256xf32>
    %c6_126 = arith.constant 6 : index
    %c0_127 = arith.constant 0 : index
    %c0_128 = arith.constant 0 : index
    %139 = vector.load %arg2[%c6_126, %c0_127, %c0_128] : memref<9x1x256xf32, #tpu.memory_space<vmem>>, vector<1x1x256xf32>
    %140 = vector.shape_cast %139 : vector<1x1x256xf32> to vector<1x256xf32>
    %141 = vector.broadcast %140 : vector<1x256xf32> to vector<12x256xf32>
    %142 = arith.mulf %138, %141 : vector<12x256xf32>
    %c6_129 = arith.constant 6 : index
    %c0_130 = arith.constant 0 : index
    %c0_131 = arith.constant 0 : index
    %143 = vector.load %arg6[%c6_129, %c0_130, %c0_131] : memref<9x12x12xf32, #tpu.memory_space<vmem>>, vector<1x12x12xf32>
    %144 = vector.shape_cast %143 : vector<1x12x12xf32> to vector<12x12xf32>
    %cst_132 = arith.constant dense<0.000000e+00> : vector<12x256xf32>
    %145 = tpu.matmul %144, %142, %cst_132 {dimension_numbers = #tpu.dot_dimension_numbers<[1], [0], [0], [1], [0, 0, 1, 1], [], []>} : vector<12x12xf32>, vector<12x256xf32>, vector<12x256xf32> -> vector<12x256xf32>
    %146 = arith.addf %137, %145 : vector<12x256xf32>
    %c0_133 = arith.constant 0 : index
    %c48_134 = arith.constant 48 : index
    %147 = vector.load %arg17[%c0_133, %c48_134] : memref<12x320xf32, #tpu.memory_space<vmem>>, vector<12x256xf32>
    %c7_135 = arith.constant 7 : index
    %c0_136 = arith.constant 0 : index
    %c0_137 = arith.constant 0 : index
    %148 = vector.load %arg2[%c7_135, %c0_136, %c0_137] : memref<9x1x256xf32, #tpu.memory_space<vmem>>, vector<1x1x256xf32>
    %149 = vector.shape_cast %148 : vector<1x1x256xf32> to vector<1x256xf32>
    %150 = vector.broadcast %149 : vector<1x256xf32> to vector<12x256xf32>
    %151 = arith.mulf %147, %150 : vector<12x256xf32>
    %c7_138 = arith.constant 7 : index
    %c0_139 = arith.constant 0 : index
    %c0_140 = arith.constant 0 : index
    %152 = vector.load %arg6[%c7_138, %c0_139, %c0_140] : memref<9x12x12xf32, #tpu.memory_space<vmem>>, vector<1x12x12xf32>
    %153 = vector.shape_cast %152 : vector<1x12x12xf32> to vector<12x12xf32>
    %cst_141 = arith.constant dense<0.000000e+00> : vector<12x256xf32>
    %154 = tpu.matmul %153, %151, %cst_141 {dimension_numbers = #tpu.dot_dimension_numbers<[1], [0], [0], [1], [0, 0, 1, 1], [], []>} : vector<12x12xf32>, vector<12x256xf32>, vector<12x256xf32> -> vector<12x256xf32>
    %155 = arith.addf %146, %154 : vector<12x256xf32>
    %c0_142 = arith.constant 0 : index
    %c49_143 = arith.constant 49 : index
    %156 = vector.load %arg17[%c0_142, %c49_143] : memref<12x320xf32, #tpu.memory_space<vmem>>, vector<12x256xf32>
    %c8_144 = arith.constant 8 : index
    %c0_145 = arith.constant 0 : index
    %c0_146 = arith.constant 0 : index
    %157 = vector.load %arg2[%c8_144, %c0_145, %c0_146] : memref<9x1x256xf32, #tpu.memory_space<vmem>>, vector<1x1x256xf32>
    %158 = vector.shape_cast %157 : vector<1x1x256xf32> to vector<1x256xf32>
    %159 = vector.broadcast %158 : vector<1x256xf32> to vector<12x256xf32>
    %160 = arith.mulf %156, %159 : vector<12x256xf32>
    %c8_147 = arith.constant 8 : index
    %c0_148 = arith.constant 0 : index
    %c0_149 = arith.constant 0 : index
    %161 = vector.load %arg6[%c8_147, %c0_148, %c0_149] : memref<9x12x12xf32, #tpu.memory_space<vmem>>, vector<1x12x12xf32>
    %162 = vector.shape_cast %161 : vector<1x12x12xf32> to vector<12x12xf32>
    %cst_150 = arith.constant dense<0.000000e+00> : vector<12x256xf32>
    %163 = tpu.matmul %162, %160, %cst_150 {dimension_numbers = #tpu.dot_dimension_numbers<[1], [0], [0], [1], [0, 0, 1, 1], [], []>} : vector<12x12xf32>, vector<12x256xf32>, vector<12x256xf32> -> vector<12x256xf32>
    %164 = arith.addf %155, %163 : vector<12x256xf32>
    %c0_151 = arith.constant 0 : index
    %c0_152 = arith.constant 0 : index
    %165 = vector.load %arg7[%c0_151, %c0_152] : memref<12x1xf32, #tpu.memory_space<vmem>>, vector<12x1xf32>
    %166 = vector.broadcast %165 : vector<12x1xf32> to vector<12x256xf32>
    %167 = arith.mulf %164, %166 : vector<12x256xf32>
    %c0_153 = arith.constant 0 : index
    %c0_154 = arith.constant 0 : index
    %168 = vector.load %arg8[%c0_153, %c0_154] : memref<12x1xf32, #tpu.memory_space<vmem>>, vector<12x1xf32>
    %169 = vector.broadcast %168 : vector<12x1xf32> to vector<12x256xf32>
    %170 = arith.addf %167, %169 : vector<12x256xf32>
    %171 = arith.addf %170, %0 : vector<12x256xf32>
    %cst_155 = arith.constant 0.000000e+00 : f32
    %172 = vector.broadcast %cst_155 : f32 to vector<12x256xf32>
    %173 = arith.maximumf %171, %172 : vector<12x256xf32>
    %c0_156 = arith.constant 0 : index
    %c0_157 = arith.constant 0 : index
    %174 = vector.load %arg9[%c0_156, %c0_157] : memref<256x96xf32, #tpu.memory_space<vmem>>, vector<256x96xf32>
    %cst_158 = arith.constant dense<0.000000e+00> : vector<12x96xf32>
    %175 = tpu.matmul %173, %174, %cst_158 {dimension_numbers = #tpu.dot_dimension_numbers<[1], [0], [0], [1], [0, 0, 1, 1], [], []>} : vector<12x256xf32>, vector<256x96xf32>, vector<12x96xf32> -> vector<12x96xf32>
    %c0_159 = arith.constant 0 : index
    %c0_160 = arith.constant 0 : index
    %176 = vector.load %arg11[%c0_159, %c0_160] : memref<2x12xf32, #tpu.memory_space<vmem>>, vector<2x12xf32>
    %c0_161 = arith.constant 0 : index
    %c0_162 = arith.constant 0 : index
    %177 = vector.load %arg10[%c0_161, %c0_162] : memref<12x96xf32, #tpu.memory_space<vmem>>, vector<12x96xf32>
    %178 = arith.mulf %175, %177 : vector<12x96xf32>
    %cst_163 = arith.constant dense<0.000000e+00> : vector<2x96xf32>
    %179 = tpu.matmul %176, %178, %cst_163 {dimension_numbers = #tpu.dot_dimension_numbers<[1], [0], [0], [1], [0, 0, 1, 1], [], []>} : vector<2x12xf32>, vector<12x96xf32>, vector<2x96xf32> -> vector<2x96xf32>
    %c0_164 = arith.constant 0 : index
    %c0_165 = arith.constant 0 : index
    %180 = vector.load %arg12[%c0_164, %c0_165] : memref<96x256xf32, #tpu.memory_space<vmem>>, vector<96x256xf32>
    %cst_166 = arith.constant dense<0.000000e+00> : vector<2x256xf32>
    %181 = tpu.matmul %179, %180, %cst_166 {dimension_numbers = #tpu.dot_dimension_numbers<[1], [0], [0], [1], [0, 0, 1, 1], [], []>} : vector<2x96xf32>, vector<96x256xf32>, vector<2x256xf32> -> vector<2x256xf32>
    %c0_167 = arith.constant 0 : index
    %c0_168 = arith.constant 0 : index
    %182 = vector.load %arg13[%c0_167, %c0_168] : memref<1x256xf32, #tpu.memory_space<vmem>>, vector<1x256xf32>
    %183 = vector.broadcast %182 : vector<1x256xf32> to vector<2x256xf32>
    %184 = arith.addf %181, %183 : vector<2x256xf32>
    %cst_169 = arith.constant 3.000000e+00 : f32
    %185 = vector.broadcast %cst_169 : f32 to vector<2x256xf32>
    %186 = arith.addf %184, %185 : vector<2x256xf32>
    %cst_170 = arith.constant 0.000000e+00 : f32
    %cst_171 = arith.constant 6.000000e+00 : f32
    %187 = vector.broadcast %cst_170 : f32 to vector<2x256xf32>
    %188 = arith.maximumf %187, %186 : vector<2x256xf32>
    %189 = vector.broadcast %cst_171 : f32 to vector<2x256xf32>
    %190 = arith.minimumf %189, %188 : vector<2x256xf32>
    %191 = arith.mulf %184, %190 : vector<2x256xf32>
    %cst_172 = arith.constant 0.166666672 : f32
    %192 = vector.broadcast %cst_172 : f32 to vector<2x256xf32>
    %193 = arith.mulf %191, %192 : vector<2x256xf32>
    %c0_173 = arith.constant 0 : index
    %c0_174 = arith.constant 0 : index
    %194 = vector.load %arg14[%c0_173, %c0_174] : memref<256x1xf32, #tpu.memory_space<vmem>>, vector<256x1xf32>
    %cst_175 = arith.constant dense<0.000000e+00> : vector<2x1xf32>
    %195 = tpu.matmul %193, %194, %cst_175 {dimension_numbers = #tpu.dot_dimension_numbers<[1], [0], [0], [1], [0, 0, 1, 1], [], []>} : vector<2x256xf32>, vector<256x1xf32>, vector<2x1xf32> -> vector<2x1xf32>
    %c0_176 = arith.constant 0 : index
    %c0_177 = arith.constant 0 : index
    %196 = vector.load %arg15[%c0_176, %c0_177] : memref<1x1xf32, #tpu.memory_space<vmem>>, vector<1x1xf32>
    %197 = vector.broadcast %196 : vector<1x1xf32> to vector<2x1xf32>
    %198 = arith.addf %195, %197 : vector<2x1xf32>
    %c0_178 = arith.constant 0 : index
    %c0_179 = arith.constant 0 : index
    %199 = vector.load %arg16[%c0_178, %c0_179] : memref<2x1xf32, #tpu.memory_space<vmem>>, vector<2x1xf32>
    tpu.vector_store %arg16[%c0_178, %c0_179], %198 {strides = array<i32>} : memref<2x1xf32, #tpu.memory_space<vmem>>, vector<2x1xf32>,
    return
  }
  func.func @transform_0(%arg0: i32) -> (i32, i32) {
    %c0_i32 = arith.constant 0 : i32
    %c0_i32_0 = arith.constant 0 : i32
    return %arg0, %c0_i32 : i32, i32
  }
  func.func @transform_1(%arg0: i32) -> (i32, i32, i32) {
    %c0_i32 = arith.constant 0 : i32
    %c0_i32_0 = arith.constant 0 : i32
    %c0_i32_1 = arith.constant 0 : i32
    %c0_i32_2 = arith.constant 0 : i32
    return %c0_i32, %c0_i32_0, %c0_i32_1 : i32, i32, i32
  }
  func.func @transform_2(%arg0: i32) -> (i32, i32, i32) {
    %c0_i32 = arith.constant 0 : i32
    %c0_i32_0 = arith.constant 0 : i32
    %c0_i32_1 = arith.constant 0 : i32
    %c0_i32_2 = arith.constant 0 : i32
    return %c0_i32, %c0_i32_0, %c0_i32_1 : i32, i32, i32
  }
  func.func @transform_3(%arg0: i32) -> (i32, i32) {
    %c0_i32 = arith.constant 0 : i32
    %c0_i32_0 = arith.constant 0 : i32
    %c0_i32_1 = arith.constant 0 : i32
    return %c0_i32, %c0_i32_0 : i32, i32
  }
  func.func @transform_4(%arg0: i32) -> (i32, i32) {
    %c0_i32 = arith.constant 0 : i32
    %c0_i32_0 = arith.constant 0 : i32
    %c0_i32_1 = arith.constant 0 : i32
    return %c0_i32, %c0_i32_0 : i32, i32
  }
  func.func @transform_5(%arg0: i32) -> (i32, i32, i32) {
    %c0_i32 = arith.constant 0 : i32
    %c0_i32_0 = arith.constant 0 : i32
    %c0_i32_1 = arith.constant 0 : i32
    %c0_i32_2 = arith.constant 0 : i32
    return %c0_i32, %c0_i32_0, %c0_i32_1 : i32, i32, i32
  }
  func.func @transform_6(%arg0: i32) -> (i32, i32) {
    %c0_i32 = arith.constant 0 : i32
    %c0_i32_0 = arith.constant 0 : i32
    %c0_i32_1 = arith.constant 0 : i32
    return %c0_i32, %c0_i32_0 : i32, i32
  }
  func.func @transform_7(%arg0: i32) -> (i32, i32) {
    %c0_i32 = arith.constant 0 : i32
    %c0_i32_0 = arith.constant 0 : i32
    %c0_i32_1 = arith.constant 0 : i32
    return %c0_i32, %c0_i32_0 : i32, i32
  }
  func.func @transform_8(%arg0: i32) -> (i32, i32) {
    %c0_i32 = arith.constant 0 : i32
    %c0_i32_0 = arith.constant 0 : i32
    %c0_i32_1 = arith.constant 0 : i32
    return %c0_i32, %c0_i32_0 : i32, i32
  }
  func.func @transform_9(%arg0: i32) -> (i32, i32) {
    %c0_i32 = arith.constant 0 : i32
    %c0_i32_0 = arith.constant 0 : i32
    %c0_i32_1 = arith.constant 0 : i32
    return %c0_i32, %c0_i32_0 : i32, i32
  }
  func.func @transform_10(%arg0: i32) -> (i32, i32) {
    %c0_i32 = arith.constant 0 : i32
    %c0_i32_0 = arith.constant 0 : i32
    %c0_i32_1 = arith.constant 0 : i32
    return %c0_i32, %c0_i32_0 : i32, i32
  }
  func.func @transform_11(%arg0: i32) -> (i32, i32) {
    %c0_i32 = arith.constant 0 : i32
    %c0_i32_0 = arith.constant 0 : i32
    %c0_i32_1 = arith.constant 0 : i32
    return %c0_i32, %c0_i32_0 : i32, i32
  }
  func.func @transform_12(%arg0: i32) -> (i32, i32) {
    %c0_i32 = arith.constant 0 : i32
    %c0_i32_0 = arith.constant 0 : i32
    %c0_i32_1 = arith.constant 0 : i32
    return %c0_i32, %c0_i32_0 : i32, i32
  }
  func.func @transform_13(%arg0: i32) -> (i32, i32) {
    %c0_i32 = arith.constant 0 : i32
    %c0_i32_0 = arith.constant 0 : i32
    %c0_i32_1 = arith.constant 0 : i32
    return %c0_i32, %c0_i32_0 : i32, i32
  }
  func.func @transform_14(%arg0: i32) -> (i32, i32) {
    %c0_i32 = arith.constant 0 : i32
    %c0_i32_0 = arith.constant 0 : i32
    %c0_i32_1 = arith.constant 0 : i32
    return %c0_i32, %c0_i32_0 : i32, i32
  }
  func.func @transform_15(%arg0: i32) -> (i32, i32) {
    %c0_i32 = arith.constant 0 : i32
    %c0_i32_0 = arith.constant 0 : i32
    return %arg0, %c0_i32 : i32, i32
  }
}

</mosaic_0001>

<bundles_post_ra>
// kernel: tpu_custom_call.1
= control target key start
LH: loop header
LB: loop body
LE: loop exit
PB: predicated region body
PF: predicated region fallthrough
CT: control target
= control target key end

     0   :  { %s2622_s24 = smov 32   ;;  %s2623_s25 = smov 16   ;;  %v2631_v28 = vmov 0.0   ;;  %vm62_vm0 = vcmask 519168   ;;  %vm58_vm1 = vcmask 523264   ;;  %vm89_vm2 = vcmask 1043712   ;;  %s3932_s0 = inlined_call_operand.vmem [shape: f32[12,256], index: 0, kind: input, shape index: {}]   ;;  %s3933_s1 = inlined_call_operand.vmem [shape: f32[9,1,256], index: 1, kind: input, shape index: {}]   ;;  %s3934_s2 = inlined_call_operand.vmem [shape: f32[9,12,12], index: 2, kind: input, shape index: {}]   ;;  %s3935_s3 = inlined_call_operand.vmem [shape: f32[12,1], index: 3, kind: input, shape index: {}]   ;;  %s3936_s4 = inlined_call_operand.vmem [shape: f32[12,1], index: 4, kind: input, shape index: {}]   ;;  %s3937_s6 = inlined_call_operand.vmem [shape: f32[12,1], index: 6, kind: input, shape index: {}]   ;;  %s3938_s7 = inlined_call_operand.vmem [shape: f32[12,1], index: 7, kind: input, shape index: {}]   ;;  %s3939_s5 = inlined_call_operand.vmem [shape: f32[9,12,12], index: 5, kind: input, shape index: {}]   ;;  %s3940_s8 = inlined_call_operand.vmem [shape: f32[256,96], index: 8, kind: input, shape index: {}]   ;;  %s3941_s11 = inlined_call_operand.vmem [shape: f32[96,256], index: 11, kind: input, shape index: {}]   ;;  %s3942_s9 = inlined_call_operand.vmem [shape: f32[12,96], index: 9, kind: input, shape index: {}]   ;;  %s3943_s10 = inlined_call_operand.vmem [shape: f32[2,12], index: 10, kind: input, shape index: {}]   ;;  %s3944_s13 = inlined_call_operand.vmem [shape: f32[256,1], index: 13, kind: input, shape index: {}]   ;;  %s3945_s14 = inlined_call_operand.<no memory space> [shape: f32[1,1], index: 14, kind: input, shape index: {}]   ;;  %s3946_s12 = inlined_call_operand.vmem [shape: f32[1,256], index: 12, kind: input, shape index: {}]   ;;  %s3947_s15 = inlined_call_operand.vmem [shape: f32[2,1], index: 15, kind: output, shape index: {}]  }
   0x1   :  { %v54_v0 = vld [vmem:[%s3932_s0 + $0x10] sm:$0xf]  ;;  %v52_v1 = vld [vmem:[%s3932_s0] sm:$0xff]  ;;  %v55_v4 = vld [vmem:[%s3932_s0 + $0x18] sm:$0xf]  ;;  %s2624_s19 = smov 15  }
   0x2   :  { %v2344_v2 = vld [vmem:[%s3933_s1 + $0x2] sm:$0x3]  ;;  %72 = vrot.lane.b32.xlu0 %v54_v0, %s2622_s24  ;;  %68 = vrot.lane.b32.xlu1 %v52_v1, %s2622_s24  ;;  %v53_v5 = vld [vmem:[%s3932_s0 + $0x8] sm:$0xff]  ;;  %s2625_s22 = smov 17   ;;  %s2626_s23 = smov 31   ;;  %56 = vst [vmem:[#allocation2] sm:$0xff] %v2631_v28 }
   0x3   :  { %v124_v3 = vperm.slane %v2344_v2, 0  ;;  %v125_v6 = vperm.slane %v2344_v2, 1  ;;  %v100_v7 = vld [vmem:[%s3933_s1] sm:$0x3]  ;;  %v2359_v8 = vld [vmem:[%s3933_s1 + $0x4] sm:$0x3] }
   0x4   :  { %v102_v9 = vperm.slane %v100_v7, 0  ;;  %v103_v10 = vperm.slane %v100_v7, 1  ;;  %v311_v11 = vperm.slane %v2359_v8, 0  ;;  %v2368_v12 = vld [vmem:[%s3933_s1 + $0x6] sm:$0x3]  ;;  %v312_v13 = vperm.slane %v2359_v8, 1 }
   0x5   :  { %126 = vrot.lane.b32.xlu2 %v124_v3, %s2623_s25  ;;  %v419_v14 = vperm.slane %v2368_v12, 0  ;;  %v420_v15 = vperm.slane %v2368_v12, 1  ;;  %v2385_v16 = vld [vmem:[%s3933_s1 + $0xa] sm:$0x3]  ;;  %v2394_v17 = vld [vmem:[%s3933_s1 + $0xc] sm:$0x3] }
   0x6   :  { %v615_v18 = vperm.slane %v2385_v16, 0  ;;  %v616_v19 = vperm.slane %v2385_v16, 1  ;;  %v724_v20 = vperm.slane %v2394_v17, 1  ;;  %s2627_s30 = smov 33   ;;  %v2403_v21 = vld [vmem:[%s3933_s1 + $0xe] sm:$0x3] }
   0x7   :  { %s2628_s18 = smov 47   ;;  %v832_v22 = vperm.slane %v2403_v21, 1  ;;  %v723_v23 = vperm.slane %v2394_v17, 0  ;;  %v831_v24 = vperm.slane %v2403_v21, 0  ;;  %s2629_s20 = smov 48   ;;  %59 = vst.msk [vmem:[#allocation2 + $0x10] sm:$0xff] %vm58_vm1, %v2631_v28 }
   0x8   :  { %v2412_v25 = vld [vmem:[%s3933_s1 + $0x10] sm:$0x3]  ;;  %s2630_s27 = smov 49   ;;  %60 = vst [vmem:[#allocation2 + $0x18] sm:$0xf] %v2631_v28  ;;  %vm85_vm3 = vcmask 1047808  }
   0x9   :  { %v939_v26 = vperm.slane %v2412_v25, 0  ;;  %v940_v27 = vperm.slane %v2412_v25, 1  ;;  %61 = vst [vmem:[#allocation2 + $0x20] sm:$0xf] %v2631_v28  ;;  %vm76_vm4 = vcmask 261120   ;;  %vm92_vm5 = vcmask 257024  }
   0xa   :  { %74 = vrot.lane.b32.xlu0 %v55_v4, %s2622_s24  ;;  %70 = vrot.lane.b32.xlu1 %v53_v5, %s2622_s24  ;;  %63 = vst.msk [vmem:[#allocation2 + $0x28] sm:$0xf] %vm62_vm0, %v2631_v28  ;;  %s3970_s28 = smov 96   ;;  %s3960_s29 = smov 113   ;;  %vm130_vm6 = vcmask 130048   ;;  %vm108_vm7 = vcmask 121856  }
   0xb   :  { %s3968_s16 = smov 112   ;;  %s3948_s17 = smov 111   ;;  %vm3963_vm8 = vcmask 138240   ;;  %vm3962_vm9 = vcmask 252928   ;;  %vm621_vm10 = vcmask 269312   ;;  %vm729_vm11 = vcmask 384000  }
   0xc   :  { %s3958_s21 = smov 97   ;;  %s3950_s26 = smov 95   ;;  %vm837_vm12 = vcmask 392192   ;;  %vm945_vm13 = vcmask 400384   ;;  %vm545_vm14 = vcmask 785408   ;;  %vm176_vm15 = vcmask 1043456  }
   0xd   :  { %128 = vrot.lane.b32.xlu2 %v125_v6, %s2623_s25  ;;  %vm162_vm0 = vcmask 916480   ;;  %vm169_vm1 = vcmask 97280  }
  0x12   :  { %104 = vrot.lane.b32.xlu0 %v102_v9, %s2624_s19  ;;  %106 = vrot.lane.b32.xlu1 %v103_v10, %s2624_s19 }
  0x15   :  { %313 = vrot.lane.b32.xlu2 %v311_v11, %s2625_s22 }
  0x1a   :  { %315 = vrot.lane.b32.xlu0 %v312_v13, %s2625_s22  ;;  %421 = vrot.lane.b32.xlu1 %v419_v14, %s2626_s23 }
  0x1d   :  { %423 = vrot.lane.b32.xlu2 %v420_v15, %s2626_s23 }
  0x22   :  { %617 = vrot.lane.b32.xlu0 %v615_v18, %s2627_s30  ;;  %619 = vrot.lane.b32.xlu1 %v616_v19, %s2627_s30 }
  0x25   :  { %727 = vrot.lane.b32.xlu2 %v724_v20, %s2628_s18 }
  0x2a   :  { %835 = vrot.lane.b32.xlu0 %v832_v22, %s2629_s20  ;;  %725 = vrot.lane.b32.xlu1 %v723_v23, %s2628_s18 }
  0x2d   :  { %833 = vrot.lane.b32.xlu2 %v831_v24, %s2629_s20 }
  0x32   :  { %941 = vrot.lane.b32.xlu0 %v939_v26, %s2630_s27  ;;  %943 = vrot.lane.b32.xlu1 %v940_v27, %s2630_s27 }
  0x5f   :  { %v127_v31 = vpop.permute.xlu2 %126 }
  0x67   :  { %v129_v36 = vpop.permute.xlu2 %128 }
  0x68   :  { %v131_v54 = vsel %vm130_vm6, %v127_v31, %v129_v36 }
  0x6f   :  { %v314_v43 = vpop.permute.xlu2 %313 }
  0x74   :  { %v73_v29 = vpop.permute.xlu0 %72  ;;  %v69_v30 = vpop.permute.xlu1 %68 }
  0x75   :  { %90 = vst.msk [vmem:[#allocation2 + $0x18] sm:$0xf] %vm89_vm2, %v73_v29 }
  0x76   :  { %86 = vst.msk [vmem:[#allocation2] sm:$0xff] %vm85_vm3, %v69_v30 }
  0x77   :  { %v424_v49 = vpop.permute.xlu2 %423 }
  0x7c   :  { %v75_v32 = vpop.permute.xlu0 %74  ;;  %v71_v33 = vpop.permute.xlu1 %70  ;;  %v2780_v34 = vld [vmem:[#allocation2 + $0x18] sm:$0xf] }
  0x7d   :  { %v78_v35 = vsel %vm76_vm4, %v73_v29, %v75_v32  ;;  %93 = vst.msk [vmem:[#allocation2 + $0x28] sm:$0xf] %vm92_vm5, %v75_v32  ;;  %539 = vrot.lane.b32.xlu1 %v2780_v34, %s3970_s28  ;;  %v138_v42 = vmul.f32 %v127_v31, %v2780_v34  ;;  %v325_v46 = vmul.f32 %v314_v43, %v2780_v34  ;;  %v2822_v59 = vld [vmem:[#allocation2] sm:$0xff] }
  0x7e   :  { %91 = vst [vmem:[#allocation2 + $0x20] sm:$0xf] %v78_v35  ;;  %v2820_v58 = vsel %vm76_vm4, %v69_v30, %v71_v33  ;;  %v135_v62 = vmul.f32 %v127_v31, %v2822_v59  ;;  %v322_v14 = vmul.f32 %v314_v43, %v2822_v59 }
  0x7f   :  { %88 = vst.msk [vmem:[#allocation2 + $0x10] sm:$0xff] %vm76_vm4, %v71_v33  ;;  %v2524_v61 = vpack.i.bf16 %v2820_v58, %v2822_v59  ;;  %v136_v63 = vmul.f32 %v131_v54, %v2820_v58  ;;  %v728_v25 = vpop.permute.xlu2 %727 }
  0x81   :  { %v2529_v2 = vpack.i.bf16 %v136_v63, %v135_v62 }
  0x84   :  { %v2787_v37 = vld [vmem:[#allocation2 + $0x28] sm:$0xf]  ;;  %v107_v38 = vpop.permute.xlu1 %106  ;;  %v105_v45 = vpop.permute.xlu0 %104 }
  0x85   :  { %543 = vrot.lane.b32.xlu0 %v2787_v37, %s3970_s28  ;;  %v2791_v39 = vld [vmem:[#allocation2 + $0x20] sm:$0xf]  ;;  %v140_v44 = vmul.f32 %v129_v36, %v2787_v37  ;;  %v118_v48 = vmul.f32 %v107_v38, %v2787_v37  ;;  %v435_v50 = vmul.f32 %v424_v49, %v2787_v37  ;;  %v116_v52 = vmul.f32 %v105_v45, %v2780_v34 }
  0x86   :  { %v2793_v40 = vld [vmem:[#allocation2 + $0x10] sm:$0xff]  ;;  %541 = vrot.lane.b32.xlu2 %v2791_v39, %s3970_s28  ;;  %v139_v55 = vmul.f32 %v131_v54, %v2791_v39  ;;  %v109_v1 = vsel %vm108_vm7, %v105_v45, %v107_v38  ;;  %v113_v7 = vmul.f32 %v105_v45, %v2822_v59  ;;  %v739_v29 = vmul.f32 %v728_v25, %v2787_v37 }
  0x87   :  { %v115_v41 = vmul.f32 %v107_v38, %v2793_v40  ;;  %v137_v47 = vmul.f32 %v129_v36, %v2793_v40  ;;  %v432_v0 = vmul.f32 %v424_v49, %v2793_v40  ;;  %v117_v3 = vmul.f32 %v109_v1, %v2791_v39  ;;  %v834_v32 = vpop.permute.xlu2 %833 }
  0x88   :  { %v114_v8 = vmul.f32 %v109_v1, %v2820_v58  ;;  %v845_v36 = vmul.f32 %v834_v32, %v2780_v34 }
  0x89   :  { %237 = vrot.lane.b32.xlu1 %v115_v41, %s3960_s29 }
  0x8a   :  { %v2534_v12 = vpack.i.bf16 %v114_v8, %v113_v7 }
  0x8c   :  { %v316_v51 = vpop.permute.xlu0 %315  ;;  %v422_v56 = vpop.permute.xlu1 %421 }
  0x8d   :  { %156 = vrot.lane.b32.xlu0 %v138_v42, %s3968_s16  ;;  %v324_v53 = vmul.f32 %v316_v51, %v2793_v40  ;;  %v327_v57 = vmul.f32 %v316_v51, %v2787_v37  ;;  %v433_v60 = vmul.f32 %v422_v56, %v2780_v34  ;;  %v318_v10 = vsel %vm3963_vm8, %v314_v43, %v316_v51 }
  0x8e   :  { %160 = vrot.lane.b32.xlu2 %v140_v44, %s3968_s16  ;;  %v323_v11 = vmul.f32 %v318_v10, %v2820_v58  ;;  %v426_v16 = vsel %vm3962_vm9, %v422_v56, %v424_v49  ;;  %v326_v19 = vmul.f32 %v318_v10, %v2791_v39  ;;  %v430_v23 = vmul.f32 %v422_v56, %v2822_v59 }
  0x8f   :  { %v434_v17 = vmul.f32 %v426_v16, %v2791_v39  ;;  %v431_v24 = vmul.f32 %v426_v16, %v2820_v58  ;;  %v736_v43 = vmul.f32 %v728_v25, %v2793_v40  ;;  %vm3965_vm9 = vcmask 908288  }
  0x90   :  { %v2539_v15 = vpack.i.bf16 %v323_v11, %v322_v14  ;;  %vm3964_vm8 = vcmask 924672  }
  0x91   :  { %343 = vrot.lane.b32.xlu1 %v325_v46, %s3948_s17  ;;  %v2544_v27 = vpack.i.bf16 %v431_v24, %v430_v23  ;;  %v842_v46 = vmul.f32 %v834_v32, %v2822_v59 }
  0x94   :  { %v618_v4 = vpop.permute.xlu0 %617  ;;  %v620_v6 = vpop.permute.xlu1 %619 }
  0x95   :  { %154 = vrot.lane.b32.xlu0 %v137_v47, %s3968_s16  ;;  %v629_v5 = vmul.f32 %v618_v4, %v2780_v34  ;;  %v628_v9 = vmul.f32 %v620_v6, %v2793_v40  ;;  %v631_v13 = vmul.f32 %v620_v6, %v2787_v37  ;;  %v622_v18 = vsel %vm621_vm10, %v618_v4, %v620_v6 }
  0x96   :  { %243 = vrot.lane.b32.xlu2 %v118_v48, %s3960_s29  ;;  %v626_v20 = vmul.f32 %v618_v4, %v2822_v59  ;;  %v627_v21 = vmul.f32 %v622_v18, %v2820_v58  ;;  %v630_v22 = vmul.f32 %v622_v18, %v2791_v39 }
  0x98   :  { %v2549_v26 = vpack.i.bf16 %v627_v21, %v626_v20 }
  0x99   :  { %455 = vrot.lane.b32.xlu1 %v435_v50, %s3958_s21 }
  0x9c   :  { %v726_v28 = vpop.permute.xlu1 %725  ;;  %v836_v35 = vpop.permute.xlu0 %835 }
  0x9d   :  { %239 = vrot.lane.b32.xlu0 %v116_v52, %s3960_s29  ;;  %v730_v30 = vsel %vm729_vm11, %v726_v28, %v728_v25  ;;  %v737_v33 = vmul.f32 %v726_v28, %v2780_v34  ;;  %v838_v38 = vsel %vm837_vm12, %v834_v32, %v836_v35  ;;  %v734_v41 = vmul.f32 %v726_v28, %v2822_v59 }
  0x9e   :  { %341 = vrot.lane.b32.xlu2 %v324_v53, %s3948_s17  ;;  %v738_v31 = vmul.f32 %v730_v30, %v2791_v39  ;;  %v735_v42 = vmul.f32 %v730_v30, %v2820_v58  ;;  %v843_v44 = vmul.f32 %v838_v38, %v2820_v58  ;;  %v847_v51 = vmul.f32 %v836_v35, %v2787_v37 }
  0x9f   :  { %v846_v53 = vmul.f32 %v838_v38, %v2791_v39 }
  0xa0   :  { %v2554_v45 = vpack.i.bf16 %v735_v42, %v734_v41  ;;  %v2559_v47 = vpack.i.bf16 %v843_v44, %v842_v46 }
  0xa1   :  { %158 = vrot.lane.b32.xlu1 %v139_v55, %s3968_s16 }
  0xa4   :  { %v942_v49 = vpop.permute.xlu0 %941  ;;  %v944_v50 = vpop.permute.xlu1 %943 }
  0xa5   :  { %347 = vrot.lane.b32.xlu0 %v327_v57, %s3948_s17  ;;  %v946_v52 = vsel %vm945_vm13, %v942_v49, %v944_v50  ;;  %v953_v56 = vmul.f32 %v942_v49, %v2780_v34  ;;  %v844_v57 = vmul.f32 %v836_v35, %v2793_v40  ;;  %v952_v62 = vmul.f32 %v944_v50, %v2793_v40  ;;  %v119_v35 = vld [vmem:[%s3934_s2] sm:$0xff] }
  0xa6   :  { %451 = vrot.lane.b32.xlu2 %v433_v60, %s3958_s21  ;;  %v954_v54 = vmul.f32 %v946_v52, %v2791_v39  ;;  %v950_v60 = vmul.f32 %v942_v49, %v2822_v59  ;;  %v955_v1 = vmul.f32 %v944_v50, %v2787_v37 }
  0xa9   :  { %2525 = vrot.lane.b32.xlu1 %v2524_v61, %s3970_s28  ;;  %v951_v61 = vmul.f32 %v946_v52, %v2820_v58 }
  0xab   :  { %v2564_v34 = vpack.i.bf16 %v951_v61, %v950_v60 }
  0xad   :  { %449 = vrot.lane.b32.xlu0 %v432_v0, %s3958_s21 }
  0xae   :  { %2530 = vrot.lane.b32.xlu2 %v2529_v2, %s3968_s16 }
  0xb1   :  { %241 = vrot.lane.b32.xlu1 %v117_v3, %s3960_s29 }
  0xb5   :  { %647 = vrot.lane.b32.xlu0 %v629_v5, %s3950_s26 }
  0xb6   :  { %537 = vrot.lane.b32.xlu2 %v2793_v40, %s3970_s28 }
  0xb9   :  { %645 = vrot.lane.b32.xlu1 %v628_v9, %s3950_s26 }
  0xbd   :  { %2535 = vrot.lane.b32.xlu0 %v2534_v12, %s3960_s29  ;;  %s3982_s29 = smov 79  }
  0xbe   :  { %651 = vrot.lane.b32.xlu2 %v631_v13, %s3950_s26  ;;  %v2346_v13 = vld [vmem:[%s3934_s2 + $0x18] sm:$0xf] }
  0xc1   :  { %2540 = vrot.lane.b32.xlu1 %v2539_v15, %s3948_s17  ;;  %v2345_v15 = vld [vmem:[%s3934_s2 + $0x10] sm:$0xff] }
  0xc5   :  { %453 = vrot.lane.b32.xlu0 %v434_v17, %s3958_s21 }
  0xc6   :  { %345 = vrot.lane.b32.xlu2 %v326_v19, %s3948_s17  ;;  %s3952_s17 = smov 81  }
  0xc9   :  { %649 = vrot.lane.b32.xlu1 %v630_v22, %s3950_s26 }
  0xcd   :  { %2550 = vrot.lane.b32.xlu0 %v2549_v26, %s3950_s26  ;;  %s3954_s26 = smov 80  }
  0xce   :  { %2545 = vrot.lane.b32.xlu2 %v2544_v27, %s3958_s21 }
  0xd1   :  { %759 = vrot.lane.b32.xlu1 %v739_v29, %s3952_s17 }
  0xd5   :  { %757 = vrot.lane.b32.xlu0 %v738_v31, %s3952_s17 }
  0xd6   :  { %755 = vrot.lane.b32.xlu2 %v737_v33, %s3952_s17 }
  0xd9   :  { %863 = vrot.lane.b32.xlu1 %v845_v36, %s3954_s26 }
  0xdd   :  { %753 = vrot.lane.b32.xlu0 %v736_v43, %s3952_s17 }
  0xde   :  { %2555 = vrot.lane.b32.xlu2 %v2554_v45, %s3952_s17  ;;  %s3956_s17 = smov 79  }
  0xe0   :  { %v2884_v48 = vpop.permute.xlu2 %541 }
  0xe1   :  { %2560 = vrot.lane.b32.xlu1 %v2559_v47, %s3954_s26 }
  0xe5   :  { %867 = vrot.lane.b32.xlu0 %v847_v51, %s3954_s26 }
  0xe6   :  { %865 = vrot.lane.b32.xlu2 %v846_v53, %s3954_s26 }
  0xe8   :  { %v161_v55 = vpop.permute.xlu2 %160 }
  0xe9   :  { %973 = vrot.lane.b32.xlu1 %v954_v54, %s3956_s17 }
  0xed   :  { %971 = vrot.lane.b32.xlu0 %v953_v56, %s3956_s17 }
  0xee   :  { %861 = vrot.lane.b32.xlu2 %v844_v57, %s3954_s26  ;;  %v120_v57 = vld [vmem:[%s3934_s2 + $0x8] sm:$0xf] }
  0xef   :  { %v540_v39 = vpop.permute.xlu1 %539 }
  0xf0   :  { %v244_v63 = vpop.permute.xlu2 %243  ;;  %v2903_v0 = vsel %vm545_vm14, %v540_v39, %v2884_v48 }
  0xf1   :  { %969 = vrot.lane.b32.xlu1 %v952_v62, %s3956_s17  ;;  %v2360_v62 = vld [vmem:[%s3934_s2 + $0x20] sm:$0xff] }
  0xf5   :  { %2565 = vrot.lane.b32.xlu0 %v2564_v34, %s3956_s17 }
  0xf6   :  { %975 = vrot.lane.b32.xlu2 %v955_v1, %s3956_s17 }
  0xf7   :  { %v2909_v59 = vpop.permute.xlu0 %543 }
  0xf8   :  { %v2911_v58 = vpop.permute.xlu2 %341  ;;  %v549_v52 = vsel %vm545_vm14, %v2884_v48, %v2909_v59 }
  0xfb   :  { %v238_v40 = vpop.permute.xlu1 %237 }
  0xff   :  { %v157_v2 = vpop.permute.xlu0 %156 }
 0x100   :  { %v2913_v3 = vpop.permute.xlu2 %451 }
 0x103   :  { %v344_v4 = vpop.permute.xlu1 %343 }
 0x107   :  { %v155_v5 = vpop.permute.xlu0 %154 }
 0x108   :  { %v2531_v6 = vpop.permute.xlu2 %2530 }
 0x109   :  { %v2533_v37 = vunpack.i.h.bf16 %v2531_v6  ;;  %v2532_v10 = vunpack.i.l.bf16 %v2531_v6 }
 0x10b   :  { %v2915_v7 = vpop.permute.xlu1 %455  ;;  %v163_v14 = vsel %vm162_vm0, %v2532_v10, %v2533_v37  ;;  %v164_v19 = vsel %vm162_vm0, %v2533_v37, %v155_v5 }
 0x10f   :  { %v240_v8 = vpop.permute.xlu0 %239 }
 0x110   :  { %v2917_v9 = vpop.permute.xlu2 %537 }
 0x113   :  { %v159_v11 = vpop.permute.xlu1 %158 }
 0x114   :  { %v165_v12 = vsel %vm162_vm0, %v157_v2, %v159_v11  ;;  %v166_v16 = vsel %vm162_vm0, %v159_v11, %v161_v55  ;;  %v2370_v11 = vld [vmem:[%s3934_s2 + $0x38] sm:$0xf] }
 0x115   :  { %2347 = vmatpush.msk.msra.mxu1 %vm176_vm15, %v165_v12  ;;  %2502 = vmatpush.msk.msra.mxu2 %vm176_vm15, %v165_v12 }
 0x117   :  { %196 = vmatpush.msra.mxu1 %v163_v14  ;;  %2503 = vmatpush.msra.mxu2 %v163_v14  ;;  %v348_v17 = vpop.permute.xlu0 %347 }
 0x118   :  { %v2931_v18 = vpop.permute.xlu2 %651  ;;  %2349 = vmatmul.msk.f32.vlgmr.msra.gmra.mxu2 %vm169_vm1, %v2346_v13  ;;  %2348 = vmatmul.msk.f32.vlgmr.msra.gmra.mxu1 %vm169_vm1, %v2345_v15 }
 0x119   :  { %2350 = vmatpush.msk.msrb.mxu1 %vm176_vm15, %v166_v16 }
 0x11b   :  { %219 = vmatpush.msrb.mxu1 %v164_v19  ;;  %v2526_v20 = vpop.permute.xlu1 %2525  ;;  %v2386_v19 = vld [vmem:[%s3934_s2 + $0x50] sm:$0xff] }
 0x11c   :  { %v2528_v45 = vunpack.i.h.bf16 %v2526_v20  ;;  %v2527_v46 = vunpack.i.l.bf16 %v2526_v20  ;;  %v2378_v20 = vld [vmem:[%s3934_s2 + $0x48] sm:$0xf] }
 0x11e   :  { %v546_v56 = vsel %vm545_vm14, %v2527_v46, %v2528_v45  ;;  %v547_v48 = vsel %vm545_vm14, %v2528_v45, %v2917_v9  ;;  %v2396_v45 = vld [vmem:[%s3934_s2 + $0x68] sm:$0xf] }
 0x11f   :  { %v450_v21 = vpop.permute.xlu0 %449 }
 0x120   :  { %v346_v22 = vpop.permute.xlu2 %345  ;;  %2351 = vmatmul.msk.f32.vlgmr.msrb.gmra.mxu1 %vm169_vm1, %v2345_v15 }
 0x121   :  { %v353_v23 = vsel %vm3965_vm9, %v346_v22, %v348_v17  ;;  %v352_v24 = vsel %vm3965_vm9, %v344_v4, %v346_v22  ;;  %v2361_v4 = vld [vmem:[%s3934_s2 + $0x28] sm:$0xf] }
 0x122   :  { %2362 = vmatpush.msk.msra.mxu0 %vm176_vm15, %v352_v24  ;;  %2365 = vmatpush.msk.msra.mxu1 %vm176_vm15, %v353_v23 }
 0x123   :  { %v242_v25 = vpop.permute.xlu1 %241 }
 0x124   :  { %v248_v26 = vsel %vm3964_vm8, %v240_v8, %v242_v25  ;;  %v249_v27 = vsel %vm3964_vm8, %v242_v25, %v244_v63  ;;  %v1044_v25 = vld [vmem:[%s3935_s3] sm:$0xff] }
 0x125   :  { %2353 = vmatpush.msk.msrb.mxu2 %vm176_vm15, %v248_v26  ;;  %2356 = vmatpush.msk.msra.mxu3 %vm176_vm15, %v249_v27  ;;  %v1061_v26 = vld [vmem:[%s3936_s4 + $0x8] sm:$0xf] }
 0x127   :  { %v648_v28 = vpop.permute.xlu0 %647 }
 0x128   :  { %v2546_v29 = vpop.permute.xlu2 %2545  ;;  %2352 = vmatmul.msk.f32.gmra.mxu1 %vm169_vm1, %v2346_v13  ;;  %v2377_v13 = vld [vmem:[%s3934_s2 + $0x40] sm:$0xff] }
 0x129   :  { %v2548_v47 = vunpack.i.h.bf16 %v2546_v29  ;;  %v2547_v49 = vunpack.i.l.bf16 %v2546_v29 }
 0x12b   :  { %v646_v30 = vpop.permute.xlu1 %645 }
 0x12f   :  { %v2536_v31 = vpop.permute.xlu0 %2535 }
 0x130   :  { %v2538_v32 = vunpack.i.h.bf16 %v2536_v31  ;;  %v2537_v33 = vunpack.i.l.bf16 %v2536_v31  ;;  %v2951_v41 = vpop.permute.xlu2 %755  ;;  %v2387_v31 = vld [vmem:[%s3934_s2 + $0x58] sm:$0xf] }
 0x132   :  { %v246_v36 = vsel %vm3964_vm8, %v2537_v33, %v2538_v32  ;;  %v247_v38 = vsel %vm3964_vm8, %v2538_v32, %v238_v40  ;;  %vm3966_vm8 = vcmask 793600   ;;  %v2369_v40 = vld [vmem:[%s3934_s2 + $0x30] sm:$0xff]  ;;  %v2395_v33 = vld [vmem:[%s3934_s2 + $0x60] sm:$0xff] }
 0x133   :  { %v2541_v42 = vpop.permute.xlu1 %2540  ;;  %277 = vmatpush.msrb.mxu2 %v246_v36  ;;  %300 = vmatpush.msra.mxu3 %v247_v38  ;;  %v458_v60 = vsel %vm3966_vm8, %v2547_v49, %v2548_v47  ;;  %v459_v61 = vsel %vm3966_vm8, %v2548_v47, %v450_v21 }
 0x134   :  { %v2543_v43 = vunpack.i.h.bf16 %v2541_v42  ;;  %v2542_v44 = vunpack.i.l.bf16 %v2541_v42  ;;  %2354 = vmatmul.msk.f32.vlgmr.msrb.gmra.mxu2 %vm169_vm1, %v119_v35  ;;  %2357 = vmatmul.msk.f32.vlgmr.msra.gmra.mxu3 %vm169_vm1, %v119_v35 }
 0x136   :  { %v350_v50 = vsel %vm3965_vm9, %v2542_v44, %v2543_v43  ;;  %v351_v51 = vsel %vm3965_vm9, %v2543_v43, %v2911_v58  ;;  %vm3967_vm9 = vcmask 777216   ;;  %v1060_v43 = vld [vmem:[%s3936_s4] sm:$0xff]  ;;  %v2404_v44 = vld [vmem:[%s3934_s2 + $0x70] sm:$0xff]  ;;  %s3981_s4 = smov 95  }
 0x137   :  { %381 = vmatpush.msra.mxu0 %v350_v50  ;;  %404 = vmatpush.msra.mxu1 %v351_v51  ;;  %v454_v53 = vpop.permute.xlu0 %453  ;;  %v2405_v51 = vld [vmem:[%s3934_s2 + $0x78] sm:$0xf] }
 0x138   :  { %v460_v54 = vsel %vm3966_vm8, %v2913_v3, %v454_v53  ;;  %v461_v55 = vsel %vm3966_vm8, %v454_v53, %v2915_v7  ;;  %v2556_v34 = vpop.permute.xlu2 %2555  ;;  %2363 = vmatmul.msk.f32.vlgmr.msra.gmra.mxu0 %vm169_vm1, %v2360_v62  ;;  %2366 = vmatmul.msk.f32.vlgmr.msra.gmra.mxu1 %vm169_vm1, %v2360_v62  ;;  %vm3972_vm8 = vcmask 662528  }
 0x139   :  { %2379 = vmatpush.msk.msrb.mxu0 %vm176_vm15, %v2903_v0  ;;  %2382 = vmatpush.msk.msrb.mxu1 %vm176_vm15, %v549_v52  ;;  %v2558_v6 = vunpack.i.h.bf16 %v2556_v34  ;;  %v2557_v7 = vunpack.i.l.bf16 %v2556_v34 }
 0x13a   :  { %2371 = vmatpush.msk.msra.mxu2 %vm176_vm15, %v460_v54  ;;  %2374 = vmatpush.msk.msrb.mxu3 %vm176_vm15, %v461_v55  ;;  %v2413_v54 = vld [vmem:[%s3934_s2 + $0x80] sm:$0xff]  ;;  %v2414_v55 = vld [vmem:[%s3934_s2 + $0x88] sm:$0xf] }
 0x13b   :  { %577 = vmatpush.msrb.mxu0 %v546_v56  ;;  %600 = vmatpush.msrb.mxu1 %v547_v48  ;;  %v650_v39 = vpop.permute.xlu1 %649  ;;  %v762_v12 = vsel %vm3972_vm8, %v2557_v7, %v2558_v6 }
 0x13c   :  { %489 = vmatpush.msra.mxu2 %v458_v60  ;;  %512 = vmatpush.msrb.mxu3 %v459_v61  ;;  %v656_v63 = vsel %vm3967_vm9, %v648_v28, %v650_v39  ;;  %v657_v0 = vsel %vm3967_vm9, %v650_v39, %v2931_v18  ;;  %v2641_v28 = vmov 0  }
 0x13d   :  { %2355 = vmatmul.msk.f32.gmra.mxu2 %vm169_vm1, %v120_v57  ;;  %2358 = vmatmul.msk.f32.gmra.mxu3 %vm169_vm1, %v120_v57  ;;  %v2421_v57 = vld [vmem:[%s3933_s1 + $0x2] sm:$0x3] }
 0x13e   :  { %2388 = vmatpush.msk.msrb.mxu2 %vm176_vm15, %v656_v63  ;;  %2391 = vmatpush.msk.msra.mxu3 %vm176_vm15, %v657_v0  ;;  %v1134_v60 = vperm.slane %v2421_v57, 0  ;;  %v1135_v61 = vperm.slane %v2421_v57, 1  ;;  %v2436_v63 = vld [vmem:[%s3933_s1 + $0x4] sm:$0x3]  ;;  %v1112_v0 = vld [vmem:[%s3933_s1] sm:$0x3] }
 0x13f   :  { %v2551_v1 = vpop.permute.xlu0 %2550  ;;  %2570 = vset.pattern.permute.xlu0 %v2641_v28  ;;  %2571 = vset.pattern.permute.xlu1 %v2641_v28  ;;  %v1316_v34 = vperm.slane %v2436_v63, 1 }
 0x140   :  { %v2553_v59 = vunpack.i.h.bf16 %v2551_v1  ;;  %v2552_v58 = vunpack.i.l.bf16 %v2551_v1  ;;  %2364 = vmatmul.msk.f32.gmra.mxu0 %vm169_vm1, %v2361_v4  ;;  %2367 = vmatmul.msk.f32.gmra.mxu1 %vm169_vm1, %v2361_v4  ;;  %v866_v8 = vpop.permute.xlu2 %865  ;;  %v1114_v1 = vperm.slane %v1112_v0, 0 }
 0x141   :  { %1048 = vperm.xlu0 %2570, %v1044_v25   ;;  %1069 = vperm.xlu1 %2571, %v1061_v26   ;;  %v2480_v26 = vld [vmem:[%s3933_s1 + $0xe] sm:$0x3] }
 0x142   :  { %v654_v2 = vsel %vm3967_vm9, %v2552_v58, %v2553_v59  ;;  %v655_v3 = vsel %vm3967_vm9, %v2553_v59, %v646_v30  ;;  %vm869_vm9 = vcmask 654336   ;;  %v1045_v30 = vld [vmem:[%s3935_s3 + $0x8] sm:$0xf]  ;;  %2569 = vset.pattern.permute.xlu2 %v2641_v28  ;;  %v1823_v28 = vperm.slane %v2480_v26, 1  ;;  %s3983_s3 = smov 80  }
 0x143   :  { %v760_v5 = vpop.permute.xlu1 %759  ;;  %685 = vmatpush.msrb.mxu2 %v654_v2  ;;  %708 = vmatpush.msra.mxu3 %v655_v3  ;;  %v2445_v3 = vld [vmem:[%s3933_s1 + $0x6] sm:$0x3] }
 0x144   :  { %1053 = vperm.xlu2 %2569, %v1045_v30   ;;  %v1420_v4 = vperm.slane %v2445_v3, 0 }
 0x145   :  { %2372 = vmatmul.msk.f32.vlgmr.msra.gmra.mxu2 %vm169_vm1, %v2369_v40  ;;  %2375 = vmatmul.msk.f32.vlgmr.msrb.gmra.mxu3 %vm169_vm1, %v2369_v40 }
 0x147   :  { %v758_v9 = vpop.permute.xlu0 %757 }
 0x148   :  { %v764_v37 = vsel %vm3972_vm8, %v2951_v41, %v758_v9  ;;  %v765_v10 = vsel %vm3972_vm8, %v758_v9, %v760_v5  ;;  %2380 = vmatmul.msk.f32.vlgmr.msrb.gmra.mxu0 %vm169_vm1, %v2377_v13  ;;  %2383 = vmatmul.msk.f32.vlgmr.msrb.gmra.mxu1 %vm169_vm1, %v2377_v13  ;;  %v862_v18 = vpop.permute.xlu2 %861  ;;  %v1315_v5 = vperm.slane %v2436_v63, 0  ;;  %v1115_v13 = vperm.slane %v1112_v0, 1 }
 0x149   :  { %2397 = vmatpush.msk.msra.mxu0 %vm176_vm15, %v764_v37  ;;  %2400 = vmatpush.msk.msra.mxu1 %vm176_vm15, %v765_v10  ;;  %v2462_v10 = vld [vmem:[%s3933_s1 + $0xa] sm:$0x3] }
 0x14a   :  { %1138 = vrot.lane.b32.xlu0 %v1135_v61, %s2623_s25  ;;  %1317 = vrot.lane.b32.xlu1 %v1315_v5, %s2625_s22 }
 0x14b   :  { %v864_v14 = vpop.permute.xlu1 %863  ;;  %793 = vmatpush.msra.mxu0 %v762_v12  ;;  %v1612_v12 = vperm.slane %v2462_v10, 0 }
 0x14c   :  { %v872_v15 = vsel %vm869_vm9, %v864_v14, %v866_v8  ;;  %1064 = vperm.xlu2 %2569, %v1060_v43  }
 0x14d   :  { %2373 = vmatmul.msk.f32.gmra.mxu2 %vm169_vm1, %v2370_v11  ;;  %2376 = vmatmul.msk.f32.gmra.mxu3 %vm169_vm1, %v2370_v11  ;;  %v2471_v11 = vld [vmem:[%s3933_s1 + $0xc] sm:$0x3] }
 0x14e   :  { %2406 = vmatpush.msk.msra.mxu2 %vm176_vm15, %v872_v15  ;;  %v1717_v14 = vperm.slane %v2471_v11, 0 }
 0x14f   :  { %v754_v16 = vpop.permute.xlu0 %753 }
 0x150   :  { %v763_v17 = vsel %vm3972_vm8, %v2558_v6, %v754_v16  ;;  %2381 = vmatmul.msk.f32.gmra.mxu0 %vm169_vm1, %v2378_v20  ;;  %2384 = vmatmul.msk.f32.gmra.mxu1 %vm169_vm1, %v2378_v20  ;;  %vm977_vm8 = vcmask 646144   ;;  %v976_v35 = vpop.permute.xlu2 %975  ;;  %v1421_v6 = vperm.slane %v2445_v3, 1 }
 0x151   :  { %816 = vmatpush.msra.mxu1 %v763_v17 }
 0x152   :  { %1116 = vrot.lane.b32.xlu0 %v1114_v1, %s2624_s19  ;;  %1118 = vrot.lane.b32.xlu1 %v1115_v13, %s2624_s19 }
 0x153   :  { %v2561_v21 = vpop.permute.xlu1 %2560 }
 0x154   :  { %v2563_v22 = vunpack.i.h.bf16 %v2561_v21  ;;  %v2562_v23 = vunpack.i.l.bf16 %v2561_v21  ;;  %1136 = vrot.lane.b32.xlu2 %v1134_v60, %s2623_s25  ;;  %v1718_v21 = vperm.slane %v2471_v11, 1 }
 0x155   :  { %2389 = vmatmul.msk.f32.vlgmr.msrb.gmra.mxu2 %vm169_vm1, %v2386_v19  ;;  %2392 = vmatmul.msk.f32.vlgmr.msra.gmra.mxu3 %vm169_vm1, %v2386_v19 }
 0x156   :  { %v870_v24 = vsel %vm869_vm9, %v2562_v23, %v2563_v22  ;;  %v871_v32 = vsel %vm869_vm9, %v2563_v22, %v862_v18  ;;  %v3121_v18 = vld [vmem:[%s3933_s1 + $0x10] sm:$0x3]  ;;  %v1613_v22 = vperm.slane %v2462_v10, 1  ;;  %s3973_s1 = smov 96  }
 0x157   :  { %901 = vmatpush.msra.mxu2 %v870_v24  ;;  %v868_v27 = vpop.permute.xlu0 %867  ;;  %v1927_v20 = vperm.slane %v3121_v18, 0 }
 0x158   :  { %v873_v29 = vsel %vm869_vm9, %v866_v8, %v868_v27  ;;  %2398 = vmatmul.msk.f32.vlgmr.msra.gmra.mxu0 %vm169_vm1, %v2395_v33  ;;  %2401 = vmatmul.msk.f32.vlgmr.msra.gmra.mxu1 %vm169_vm1, %v2395_v33 }
 0x159   :  { %2409 = vmatpush.msk.msrb.mxu3 %vm176_vm15, %v873_v29  ;;  %v1822_v29 = vperm.slane %v2480_v26, 0 }
 0x15a   :  { %1424 = vrot.lane.b32.xlu0 %v1421_v6, %s2626_s23  ;;  %1721 = vrot.lane.b32.xlu1 %v1718_v21, %s2628_s18 }
 0x15b   :  { %v974_v36 = vpop.permute.xlu1 %973  ;;  %924 = vmatpush.msrb.mxu3 %v871_v32 }
 0x15c   :  { %v981_v38 = vsel %vm977_vm8, %v974_v36, %v976_v35  ;;  %1319 = vrot.lane.b32.xlu2 %v1316_v34, %s2625_s22 }
 0x15d   :  { %2390 = vmatmul.msk.f32.gmra.mxu2 %vm169_vm1, %v2387_v31  ;;  %2393 = vmatmul.msk.f32.gmra.mxu3 %vm169_vm1, %v2387_v31 }
 0x15e   :  { %2418 = vmatpush.msk.msrb.mxu1 %vm176_vm15, %v981_v38 }
 0x15f   :  { %v972_v41 = vpop.permute.xlu0 %971 }
 0x160   :  { %v980_v42 = vsel %vm977_vm8, %v972_v41, %v974_v36  ;;  %2399 = vmatmul.msk.f32.gmra.mxu0 %vm169_vm1, %v2396_v45  ;;  %2402 = vmatmul.msk.f32.gmra.mxu1 %vm169_vm1, %v2396_v45 }
 0x161   :  { %2415 = vmatpush.msk.msrb.mxu0 %vm176_vm15, %v980_v42 }
 0x162   :  { %1719 = vrot.lane.b32.xlu0 %v1717_v14, %s2628_s18  ;;  %1824 = vrot.lane.b32.xlu1 %v1822_v29, %s2629_s20  ;;  %s3976_s18 = smov 111  }
 0x163   :  { %v970_v50 = vpop.permute.xlu1 %969 }
 0x164   :  { %1422 = vrot.lane.b32.xlu2 %v1420_v4, %s2626_s23 }
 0x165   :  { %2407 = vmatmul.msk.f32.vlgmr.msra.gmra.mxu2 %vm169_vm1, %v2404_v44  ;;  %2410 = vmatmul.msk.f32.vlgmr.msrb.gmra.mxu3 %vm169_vm1, %v2404_v44 }
 0x167   :  { %v2566_v46 = vpop.permute.xlu0 %2565 }
 0x168   :  { %v2568_v47 = vunpack.i.h.bf16 %v2566_v46  ;;  %v2567_v49 = vunpack.i.l.bf16 %v2566_v46 }
 0x16a   :  { %v978_v52 = vsel %vm977_vm8, %v2567_v49, %v2568_v47  ;;  %v979_v53 = vsel %vm977_vm8, %v2568_v47, %v970_v50  ;;  %1616 = vrot.lane.b32.xlu0 %v1613_v22, %s2627_s30 }
 0x16b   :  { %1009 = vmatpush.msrb.mxu0 %v978_v52  ;;  %1032 = vmatpush.msrb.mxu1 %v979_v53 }
 0x16c   :  { %2416 = vmatmul.msk.f32.vlgmr.msrb.gmra.mxu0 %vm169_vm1, %v2413_v54  ;;  %2419 = vmatmul.msk.f32.vlgmr.msrb.gmra.mxu1 %vm169_vm1, %v2413_v54 }
 0x16d   :  { %2408 = vmatmul.msk.f32.gmra.mxu2 %vm169_vm1, %v2405_v51  ;;  %2411 = vmatmul.msk.f32.gmra.mxu3 %vm169_vm1, %v2405_v51 }
 0x16e   :  { %1614 = vrot.lane.b32.xlu2 %v1612_v12, %s2627_s30  ;;  %s3975_s30 = smov 113  }
 0x174   :  { %2417 = vmatmul.msk.f32.gmra.mxu0 %vm169_vm1, %v2414_v55  ;;  %2420 = vmatmul.msk.f32.gmra.mxu1 %vm169_vm1, %v2414_v55 }
 0x176   :  { %1929 = vrot.lane.b32.xlu2 %v1927_v20, %s2630_s27 }
 0x17e   :  { %1826 = vrot.lane.b32.xlu2 %v1823_v28, %s2629_s20  ;;  %s3977_s20 = smov 97  }
 0x195   :  { %v198_v56 = vpop.f32.mrf.mxu1 }
 0x19b   :  { %v201_v62 = vpop.f32.mrf.mxu2 }
 0x19d   :  { %v3088_v48 = vpop.f32.mrf.mxu1 }
 0x19e   :  { %v1054_v52 = vpop.permute.xlu2 %1053 }
 0x1a5   :  { %v224_v39 = vpop.f32.mrf.mxu1 }
 0x1a6   :  { %v1065_v5 = vpop.permute.xlu2 %1064 }
 0x1b3   :  { %v1070_v20 = vpop.permute.xlu1 %1069 }
 0x1b5   :  { %v383_v40 = vpop.f32.mrf.mxu0  ;;  %v406_v2 = vpop.f32.mrf.mxu1 }
 0x1b7   :  { %v279_v59 = vpop.f32.mrf.mxu2  ;;  %v302_v58 = vpop.f32.mrf.mxu3 }
 0x1b8   :  { %v280_v30 = vadd.f32 %v279_v59, %v198_v56  ;;  %v303_v43 = vadd.f32 %v302_v58, %v3088_v48  ;;  %v1049_v58 = vpop.permute.xlu0 %1048 }
 0x1ba   :  { %v412_v33 = vadd.f32 %v383_v40, %v280_v30  ;;  %v413_v53 = vadd.f32 %v406_v2, %v303_v43 }
 0x1bd   :  { %v386_v9 = vpop.f32.mrf.mxu0  ;;  %v409_v37 = vpop.f32.mrf.mxu1 }
 0x1c0   :  { %v282_v7 = vpop.f32.mrf.mxu2  ;;  %v305_v8 = vpop.f32.mrf.mxu3 }
 0x1c1   :  { %v283_v41 = vadd.f32 %v282_v7, %v201_v62  ;;  %v306_v42 = vadd.f32 %v305_v8, %v224_v39 }
 0x1c3   :  { %v414_v47 = vadd.f32 %v386_v9, %v283_v41  ;;  %v415_v49 = vadd.f32 %v409_v37, %v306_v42 }
 0x1c5   :  { %v579_v17 = vpop.f32.mrf.mxu0  ;;  %v602_v19 = vpop.f32.mrf.mxu1 }
 0x1c8   :  { %v491_v15 = vpop.f32.mrf.mxu2  ;;  %v514_v16 = vpop.f32.mrf.mxu3 }
 0x1c9   :  { %v520_v38 = vadd.f32 %v491_v15, %v412_v33  ;;  %v521_v57 = vadd.f32 %v514_v16, %v413_v53 }
 0x1cb   :  { %v608_v46 = vadd.f32 %v579_v17, %v520_v38  ;;  %v609_v48 = vadd.f32 %v602_v19, %v521_v57  ;;  %v3149_v38 = vpop.permute.xlu1 %1317 }
 0x1cd   :  { %v582_v25 = vpop.f32.mrf.mxu0  ;;  %v605_v27 = vpop.f32.mrf.mxu1 }
 0x1d0   :  { %v494_v23 = vpop.f32.mrf.mxu2  ;;  %v517_v24 = vpop.f32.mrf.mxu3 }
 0x1d1   :  { %v522_v55 = vadd.f32 %v494_v23, %v414_v47  ;;  %v523_v56 = vadd.f32 %v517_v24, %v415_v49 }
 0x1d3   :  { %v610_v62 = vadd.f32 %v582_v25, %v522_v55  ;;  %v611_v39 = vadd.f32 %v605_v27, %v523_v56  ;;  %v1928_v25 = vperm.slane %v3121_v18, 1  ;;  %v3155_v43 = vpop.permute.xlu1 %1118 }
 0x1d5   :  { %v795_v35 = vpop.f32.mrf.mxu0  ;;  %v818_v36 = vpop.f32.mrf.mxu1 }
 0x1d8   :  { %v687_v31 = vpop.f32.mrf.mxu2  ;;  %v710_v32 = vpop.f32.mrf.mxu3 }
 0x1d9   :  { %v716_v50 = vadd.f32 %v687_v31, %v608_v46  ;;  %v717_v40 = vadd.f32 %v710_v32, %v609_v48  ;;  %v3139_v32 = vpop.permute.xlu2 %1136 }
 0x1db   :  { %v824_v60 = vadd.f32 %v795_v35, %v716_v50  ;;  %v825_v8 = vadd.f32 %v818_v36, %v717_v40  ;;  %v3143_v35 = vpop.permute.xlu0 %1138  ;;  %v3159_v46 = vpop.permute.xlu1 %1721 }
 0x1dd   :  { %v798_v51 = vpop.f32.mrf.mxu0  ;;  %v821_v54 = vpop.f32.mrf.mxu1 }
 0x1e0   :  { %v690_v44 = vpop.f32.mrf.mxu2  ;;  %v713_v45 = vpop.f32.mrf.mxu3 }
 0x1e1   :  { %v718_v34 = vadd.f32 %v690_v44, %v610_v62  ;;  %v719_v1 = vadd.f32 %v713_v45, %v611_v39  ;;  %v3141_v33 = vpop.permute.xlu2 %1319 }
 0x1e3   :  { %v826_v6 = vadd.f32 %v798_v51, %v718_v34  ;;  %v827_v7 = vadd.f32 %v821_v54, %v719_v1  ;;  %v3147_v36 = vpop.permute.xlu0 %1116  ;;  %v1825_v50 = vpop.permute.xlu1 %1824 }
 0x1e8   :  { %v903_v61 = vpop.f32.mrf.mxu2  ;;  %v926_v63 = vpop.f32.mrf.mxu3 }
 0x1e9   :  { %v932_v0 = vadd.f32 %v903_v61, %v824_v60  ;;  %v1011_v59 = vpop.f32.mrf.mxu0  ;;  %v1034_v4 = vpop.f32.mrf.mxu1  ;;  %v933_v13 = vadd.f32 %v926_v63, %v825_v8 }
 0x1ea   :  { %v3145_v18 = vpop.permute.xlu2 %1422 }
 0x1eb   :  { %v1040_v3 = vadd.f32 %v1011_v59, %v932_v0  ;;  %v1041_v21 = vadd.f32 %v1034_v4, %v933_v13  ;;  %v3153_v42 = vpop.permute.xlu0 %1424 }
 0x1ed   :  { %v1056_v2 = vmul.f32 %v1049_v58, %v1040_v3  ;;  %v1057_v27 = vmul.f32 %v1049_v58, %v1041_v21 }
 0x1ef   :  { %v1072_v9 = vadd.f32 %v1065_v5, %v1056_v2  ;;  %v1073_v30 = vadd.f32 %v1065_v5, %v1057_v27 }
 0x1f0   :  { %v906_v37 = vpop.f32.mrf.mxu2  ;;  %v929_v10 = vpop.f32.mrf.mxu3 }
 0x1f1   :  { %v934_v11 = vadd.f32 %v906_v37, %v826_v6  ;;  %v935_v12 = vadd.f32 %v929_v10, %v827_v7  ;;  %v1076_v14 = vmax.f32 %v1072_v9, 0.0  ;;  %v1014_v15 = vpop.f32.mrf.mxu0  ;;  %v1037_v17 = vpop.f32.mrf.mxu1  ;;  %v1077_v31 = vmax.f32 %v1073_v30, 0.0 }
 0x1f2   :  { %v3151_v41 = vpop.permute.xlu2 %1614 }
 0x1f3   :  { %v1042_v16 = vadd.f32 %v1014_v15, %v934_v11  ;;  %1084 = vrot.lane.b32.xlu0 %v1076_v14, %s2622_s24  ;;  %v1043_v19 = vadd.f32 %v1037_v17, %v935_v12  ;;  %v1720_v45 = vpop.permute.xlu0 %1719 }
 0x1f4   :  { %v3163_v47 = vsel %vm729_vm11, %v1720_v45, %v3159_v46 }
 0x1f5   :  { %v1058_v22 = vmul.f32 %v1054_v52, %v1042_v16  ;;  %v1059_v23 = vmul.f32 %v1054_v52, %v1043_v19 }
 0x1f7   :  { %v1074_v24 = vadd.f32 %v1070_v20, %v1058_v22  ;;  %v1075_v26 = vadd.f32 %v1070_v20, %v1059_v23  ;;  %v1120_v23 = vsel %vm108_vm7, %v3147_v36, %v3155_v43 }
 0x1f9   :  { %v1078_v28 = vmax.f32 %v1074_v24, 0.0  ;;  %v1079_v29 = vmax.f32 %v1075_v26, 0.0 }
 0x1fa   :  { %v3157_v44 = vpop.permute.xlu2 %1929 }
 0x1fb   :  { %1931 = vrot.lane.b32.xlu0 %v1928_v25, %s2630_s27  ;;  %1088 = vrot.lane.b32.xlu1 %v1078_v28, %s2622_s24  ;;  %v3167_v53 = vpop.permute.xlu0 %1616  ;;  %s3980_s27 = smov 81  }
 0x1fc   :  { %1090 = vrot.lane.b32.xlu2 %v1079_v29, %s2622_s24  ;;  %v3196_v34 = vsel %vm621_vm10, %v3151_v41, %v3167_v53  ;;  %vm3988_vm10 = vcmask 924672  }
 0x1fd   :  { %vm3989_vm11 = vmmov %vm3988_vm10 }
 0x202   :  { %v1827_v49 = vpop.permute.xlu2 %1826 }
 0x203   :  { %1086 = vrot.lane.b32.xlu1 %v1077_v31, %s2622_s24  ;;  %v1828_v51 = vsel %vm837_vm12, %v1825_v50, %v1827_v49  ;;  %s3974_s24 = smov 112   ;;  %v1140_v31 = vsel %vm130_vm6, %v3139_v32, %v3143_v35  ;;  %vm3990_vm12 = vmmov %vm3988_vm10 }
 0x256   :  { %v1091_v52 = vpop.permute.xlu2 %1090 }
 0x257   :  { %1105 = vst.msk [vmem:[#allocation2 + $0x28] sm:$0xf] %vm92_vm5, %v1091_v52 }
 0x25e   :  { %v3169_v54 = vld [vmem:[#allocation2 + $0x28] sm:$0xf] }
 0x25f   :  { %v3172_v55 = vmul.f32 %v1827_v49, %v3169_v54  ;;  %v1149_v30 = vmul.f32 %v3143_v35, %v3169_v54 }
 0x265   :  { %v1085_v56 = vpop.permute.xlu0 %1084 }
 0x266   :  { %1100 = vst.msk [vmem:[#allocation2] sm:$0xff] %vm85_vm3, %v1085_v56  ;;  %vm3979_vm3 = vcmask 252928  }
 0x26d   :  { %v1089_v57 = vpop.permute.xlu1 %1088  ;;  %v3175_v60 = vld [vmem:[#allocation2] sm:$0xff]  ;;  %v3198_v1 = vpop.permute.xlu0 %1931 }
 0x26e   :  { %v1093_v61 = vsel %vm76_vm4, %v1089_v57, %v1091_v52  ;;  %1103 = vst.msk [vmem:[#allocation2 + $0x18] sm:$0xf] %vm89_vm2, %v1089_v57  ;;  %v3180_v63 = vmul.f32 %v1720_v45, %v3175_v60  ;;  %v3183_v62 = vmul.f32 %v1825_v50, %v3175_v60  ;;  %v3203_v59 = vsel %vm945_vm13, %v3157_v44, %v3198_v1 }
 0x26f   :  { %1104 = vst [vmem:[#allocation2 + $0x20] sm:$0xf] %v1093_v61  ;;  %v3212_v3 = vmul.f32 %v3151_v41, %v3175_v60  ;;  %v3247_v12 = vmul.f32 %v3157_v44, %v3175_v60  ;;  %v1124_v25 = vmul.f32 %v3147_v36, %v3175_v60  ;;  %vm3978_vm2 = vcmask 138240  }
 0x270   :  { %vm3991_vm13 = vcmask 662528  }
 0x275   :  { %v1087_v39 = vpop.permute.xlu1 %1086  ;;  %v3185_v0 = vld [vmem:[#allocation2 + $0x18] sm:$0xf] }
 0x276   :  { %v3188_v48 = vsel %vm76_vm4, %v1085_v56, %v1087_v39  ;;  %1102 = vst.msk [vmem:[#allocation2 + $0x10] sm:$0xff] %vm76_vm4, %v1087_v39  ;;  %1538 = vrot.lane.b32.xlu0 %v3185_v0, %s3973_s1  ;;  %v3205_v58 = vld [vmem:[#allocation2 + $0x20] sm:$0xf]  ;;  %v3208_v40 = vmul.f32 %v1720_v45, %v3185_v0  ;;  %v3238_v10 = vmul.f32 %v1825_v50, %v3185_v0  ;;  %vm3984_vm4 = vcmask 908288  }
 0x277   :  { %v3216_v4 = vmul.f32 %v3196_v34, %v3188_v48  ;;  %v3220_v5 = vmul.f32 %v3163_v47, %v3188_v48  ;;  %v2572_v2 = vpack.i.bf16 %v3188_v48, %v3175_v60  ;;  %v3226_v6 = vmul.f32 %v3203_v59, %v3188_v48  ;;  %vm3985_vm5 = vmmov %vm3984_vm4 }
 0x278   :  { %v3235_v37 = vmul.f32 %v1828_v51, %v3205_v58  ;;  %v3262_v17 = vmul.f32 %v1828_v51, %v3188_v48  ;;  %v1147_v20 = vmul.f32 %v3139_v32, %v3185_v0  ;;  %v1127_v21 = vmul.f32 %v3147_v36, %v3185_v0  ;;  %vm3986_vm6 = vmmov %vm3984_vm4 }
 0x279   :  { %v2602_v8 = vpack.i.bf16 %v3216_v4, %v3212_v3  ;;  %v2597_v9 = vpack.i.bf16 %v3220_v5, %v3180_v63  ;;  %v2607_v15 = vpack.i.bf16 %v3226_v6, %v3247_v12  ;;  %v1125_v24 = vmul.f32 %v1120_v23, %v3188_v48  ;;  %v2031_v5 = vld [vmem:[%s3937_s6 + $0x8] sm:$0xf]  ;;  %vm3987_vm7 = vmmov %vm3984_vm4 }
 0x27a   :  { %v2612_v19 = vpack.i.bf16 %v3262_v17, %v3183_v62  ;;  %v1328_v26 = vmul.f32 %v3149_v38, %v3185_v0  ;;  %v1433_v28 = vmul.f32 %v3145_v18, %v3185_v0  ;;  %v1145_v36 = vmul.f32 %v1140_v31, %v3188_v48 }
 0x27b   :  { %v2587_v27 = vpack.i.bf16 %v1125_v24, %v1124_v25  ;;  %v1144_v45 = vmul.f32 %v3139_v32, %v3175_v60  ;;  %v1330_v50 = vmul.f32 %v3141_v33, %v3169_v54  ;;  %v1129_v51 = vmul.f32 %v3155_v43, %v3169_v54 }
 0x27c   :  { %v1325_v32 = vmul.f32 %v3149_v38, %v3175_v60  ;;  %v1430_v39 = vmul.f32 %v3145_v18, %v3175_v60  ;;  %v1731_v3 = vmul.f32 %v3163_v47, %v3205_v58  ;;  %v2030_v47 = vld [vmem:[%s3937_s6] sm:$0xff] }
 0x27d   :  { %v3228_v7 = vld [vmem:[#allocation2 + $0x10] sm:$0xff] }
 0x27e   :  { %1536 = vrot.lane.b32.xlu1 %v3228_v7, %s3973_s1  ;;  %v1146_v11 = vmul.f32 %v3143_v35, %v3228_v7  ;;  %2573 = vrot.lane.b32.xlu0 %v2572_v2, %s3973_s1  ;;  %v1729_v13 = vmul.f32 %v3159_v46, %v3228_v7  ;;  %v3253_v14 = vmul.f32 %v3167_v53, %v3228_v7 }
 0x27f   :  { %v3259_v16 = vmul.f32 %v1827_v49, %v3228_v7  ;;  %v1327_v22 = vmul.f32 %v3141_v33, %v3228_v7  ;;  %v1126_v29 = vmul.f32 %v3155_v43, %v3228_v7  ;;  %v2577_v49 = vpack.i.bf16 %v1145_v36, %v1144_v45 }
 0x280   :  { %1163 = vrot.lane.b32.xlu2 %v1146_v11, %s3974_s24  ;;  %v1321_v35 = vsel %vm3978_vm2, %v3149_v38, %v3141_v33  ;;  %v1432_v57 = vmul.f32 %v3153_v42, %v3228_v7  ;;  %v1148_v43 = vmul.f32 %v1140_v31, %v3205_v58  ;;  %v1426_v33 = vsel %vm3979_vm3, %v3145_v18, %v3153_v42 }
 0x281   :  { %v1326_v52 = vmul.f32 %v1321_v35, %v3188_v48  ;;  %v1431_v61 = vmul.f32 %v1426_v33, %v3188_v48  ;;  %v1732_v38 = vmul.f32 %v3159_v46, %v3169_v54  ;;  %v1435_v11 = vmul.f32 %v3153_v42, %v3169_v54 }
 0x282   :  { %v1625_v48 = vmul.f32 %v3151_v41, %v3185_v0  ;;  %v1329_v46 = vmul.f32 %v1321_v35, %v3205_v58  ;;  %v1128_v18 = vmul.f32 %v1120_v23, %v3205_v58  ;;  %v1434_v60 = vmul.f32 %v1426_v33, %v3205_v58 }
 0x283   :  { %v2582_v56 = vpack.i.bf16 %v1326_v52, %v1325_v32  ;;  %v2592_v2 = vpack.i.bf16 %v1431_v61, %v1430_v39  ;;  %v1627_v41 = vmul.f32 %v3167_v53, %v3169_v54  ;;  %v1939_v42 = vmul.f32 %v3198_v1, %v3228_v7 }
 0x284   :  { %v1940_v53 = vmul.f32 %v3157_v44, %v3185_v0  ;;  %v1626_v44 = vmul.f32 %v3196_v34, %v3205_v58  ;;  %vm3993_vm2 = vcmask 793600  }
 0x285   :  { %vm3994_vm3 = vmmov %vm3993_vm2 }
 0x286   :  { %1165 = vrot.lane.b32.xlu1 %v1147_v20, %s3974_s24  ;;  %1245 = vrot.lane.b32.xlu0 %v1127_v21, %s3975_s30 }
 0x288   :  { %1344 = vrot.lane.b32.xlu2 %v1327_v22, %s3976_s18 }
 0x28e   :  { %1346 = vrot.lane.b32.xlu1 %v1328_v26, %s3976_s18  ;;  %2588 = vrot.lane.b32.xlu0 %v2587_v27, %s3975_s30  ;;  %v2422_v27 = vld [vmem:[%s3939_s5 + $0x10] sm:$0xff] }
 0x290   :  { %1451 = vrot.lane.b32.xlu2 %v1433_v28, %s3977_s20 }
 0x296   :  { %1243 = vrot.lane.b32.xlu1 %v1126_v29, %s3975_s30  ;;  %1169 = vrot.lane.b32.xlu0 %v1149_v30, %s3974_s24 }
 0x298   :  { %1542 = vrot.lane.b32.xlu2 %v3169_v54, %s3973_s1 }
 0x29e   :  { %2578 = vrot.lane.b32.xlu1 %v2577_v49, %s3974_s24  ;;  %1350 = vrot.lane.b32.xlu0 %v1330_v50, %s3976_s18  ;;  %v2423_v50 = vld [vmem:[%s3939_s5 + $0x18] sm:$0xf] }
 0x2a0   :  { %1249 = vrot.lane.b32.xlu2 %v1129_v51, %s3975_s30 }
 0x2a6   :  { %2583 = vrot.lane.b32.xlu1 %v2582_v56, %s3976_s18  ;;  %1449 = vrot.lane.b32.xlu0 %v1432_v57, %s3977_s20 }
 0x2a8   :  { %1167 = vrot.lane.b32.xlu2 %v1148_v43, %s3974_s24 }
 0x2ae   :  { %1540 = vrot.lane.b32.xlu1 %v3205_v58, %s3973_s1  ;;  %1752 = vrot.lane.b32.xlu0 %v1732_v38, %s3980_s27  ;;  %v2437_v38 = vld [vmem:[%s3939_s5 + $0x20] sm:$0xff] }
 0x2b0   :  { %2593 = vrot.lane.b32.xlu2 %v2592_v2, %s3977_s20 }
 0x2b6   :  { %1455 = vrot.lane.b32.xlu1 %v1435_v11, %s3977_s20  ;;  %1643 = vrot.lane.b32.xlu0 %v1625_v48, %s3981_s4  ;;  %v2438_v48 = vld [vmem:[%s3939_s5 + $0x28] sm:$0xf] }
 0x2b8   :  { %1348 = vrot.lane.b32.xlu2 %v1329_v46, %s3976_s18 }
 0x2be   :  { %1247 = vrot.lane.b32.xlu1 %v1128_v18, %s3975_s30  ;;  %1453 = vrot.lane.b32.xlu0 %v1434_v60, %s3977_s20 }
 0x2c0   :  { %1746 = vrot.lane.b32.xlu2 %v1729_v13, %s3980_s27 }
 0x2c6   :  { %1748 = vrot.lane.b32.xlu1 %v3208_v40, %s3980_s27  ;;  %2603 = vrot.lane.b32.xlu0 %v2602_v8, %s3981_s4  ;;  %v1941_v40 = vmul.f32 %v3203_v59, %v3205_v58  ;;  %v1942_v59 = vmul.f32 %v3198_v1, %v3169_v54  ;;  %v2047_v58 = vld [vmem:[%s3938_s7 + $0x8] sm:$0xf] }
 0x2c8   :  { %1647 = vrot.lane.b32.xlu2 %v1627_v41, %s3981_s4 }
 0x2ce   :  { %2598 = vrot.lane.b32.xlu1 %v2597_v9, %s3980_s27  ;;  %1956 = vrot.lane.b32.xlu0 %v1939_v42, %s3982_s29  ;;  %v2046_v9 = vld [vmem:[%s3938_s7] sm:$0xff] }
 0x2d0   :  { %1958 = vrot.lane.b32.xlu2 %v1940_v53, %s3982_s29 }
 0x2d6   :  { %1641 = vrot.lane.b32.xlu1 %v3253_v14, %s3981_s4  ;;  %1960 = vrot.lane.b32.xlu0 %v1941_v40, %s3982_s29 }
 0x2d8   :  { %1750 = vrot.lane.b32.xlu2 %v1731_v3, %s3980_s27 }
 0x2da   :  { %v1164_v63 = vpop.permute.xlu2 %1163 }
 0x2de   :  { %1645 = vrot.lane.b32.xlu1 %v1626_v44, %s3981_s4  ;;  %1857 = vrot.lane.b32.xlu0 %v3172_v55, %s3983_s3 }
 0x2e0   :  { %2608 = vrot.lane.b32.xlu2 %v2607_v15, %s3982_s29 }
 0x2e2   :  { %v1345_v0 = vpop.permute.xlu2 %1344 }
 0x2e6   :  { %1962 = vrot.lane.b32.xlu1 %v1942_v59, %s3982_s29  ;;  %2034 = vperm.xlu0 %2570, %v2030_v47  }
 0x2e8   :  { %v3388_v34 = vpop.permute.xlu0 %1538  ;;  %1855 = vrot.lane.b32.xlu2 %v3235_v37, %s3983_s3 }
 0x2ea   :  { %v3392_v55 = vpop.permute.xlu2 %1451 }
 0x2ee   :  { %1853 = vrot.lane.b32.xlu1 %v3238_v10, %s3983_s3  ;;  %2055 = vperm.xlu0 %2570, %v2047_v58  }
 0x2f0   :  { %v1537_v4 = vpop.permute.xlu1 %1536  ;;  %1851 = vrot.lane.b32.xlu2 %v3259_v16, %s3983_s3  ;;  %v2574_v54 = vpop.permute.xlu0 %2573 }
 0x2f1   :  { %v2576_v51 = vunpack.i.h.bf16 %v2574_v54  ;;  %v2575_v35 = vunpack.i.l.bf16 %v2574_v54 }
 0x2f2   :  { %v1543_v1 = vpop.permute.xlu2 %1542 }
 0x2f3   :  { %v1544_v33 = vsel %vm545_vm14, %v2575_v35, %v2576_v51  ;;  %v1545_v61 = vsel %vm545_vm14, %v2576_v51, %v1537_v4  ;;  %v2490_v35 = vld [vmem:[%s3939_s5 + $0x80] sm:$0xff] }
 0x2f6   :  { %2613 = vrot.lane.b32.xlu1 %v2612_v19, %s3983_s3 }
 0x2f8   :  { %v1166_v6 = vpop.permute.xlu1 %1165  ;;  %2039 = vperm.xlu2 %2569, %v2031_v5   ;;  %v3408_v7 = vpop.permute.xlu0 %1245 }
 0x2fa   :  { %v3410_v8 = vpop.permute.xlu2 %1249 }
 0x2fe   :  { %2050 = vperm.xlu1 %2571, %v2046_v9  }
 0x300   :  { %v1347_v37 = vpop.permute.xlu1 %1346  ;;  %v3415_v10 = vpop.permute.xlu0 %2588 }
 0x301   :  { %v2591_v46 = vunpack.i.h.bf16 %v3415_v10  ;;  %v2590_v18 = vunpack.i.l.bf16 %v3415_v10 }
 0x302   :  { %v1168_v12 = vpop.permute.xlu2 %1167 }
 0x303   :  { %v1173_v13 = vsel %vm162_vm0, %v1166_v6, %v1168_v12  ;;  %v1251_v3 = vsel %vm3990_vm12, %v2590_v18, %v2591_v46 }
 0x304   :  { %2424 = vmatpush.msk.msrb.mxu2 %vm176_vm15, %v1173_v13  ;;  %v2446_v13 = vld [vmem:[%s3939_s5 + $0x30] sm:$0xff] }
 0x308   :  { %v3419_v62 = vpop.permute.xlu1 %1243  ;;  %v1170_v14 = vpop.permute.xlu0 %1169 }
 0x309   :  { %v1174_v15 = vsel %vm162_vm0, %v1168_v12, %v1170_v14 }
 0x30a   :  { %v3422_v16 = vpop.permute.xlu2 %2593  ;;  %2427 = vmatpush.msk.msra.mxu3 %vm176_vm15, %v1174_v15 }
 0x30b   :  { %v2596_v44 = vunpack.i.h.bf16 %v3422_v16 }
 0x310   :  { %v2579_v17 = vpop.permute.xlu1 %2578  ;;  %v1351_v19 = vpop.permute.xlu0 %1350 }
 0x311   :  { %v2581_v20 = vunpack.i.h.bf16 %v2579_v17  ;;  %v2580_v21 = vunpack.i.l.bf16 %v2579_v17 }
 0x312   :  { %v1349_v22 = vpop.permute.xlu2 %1348 }
 0x313   :  { %v1354_v23 = vsel %vm3984_vm4, %v1347_v37, %v1349_v22  ;;  %v1355_v24 = vsel %vm3985_vm5, %v1349_v22, %v1351_v19  ;;  %v1171_v25 = vsel %vm162_vm0, %v2580_v21, %v2581_v20  ;;  %v1172_v26 = vsel %vm162_vm0, %v2581_v20, %v1164_v63  ;;  %v1130_v63 = vld [vmem:[%s3939_s5] sm:$0xff]  ;;  %vm3992_vm0 = vmmov %vm3988_vm10 }
 0x314   :  { %1202 = vmatpush.msrb.mxu2 %v1171_v25  ;;  %1225 = vmatpush.msra.mxu3 %v1172_v26  ;;  %v1252_v59 = vsel %vm3992_vm0, %v2591_v46, %v3419_v62  ;;  %vm3995_vm4 = vmmov %vm3993_vm2  ;;  %v2473_v25 = vld [vmem:[%s3939_s5 + $0x68] sm:$0xf] }
 0x315   :  { %2425 = vmatmul.msk.f32.vlgmr.msrb.gmra.mxu2 %vm169_vm1, %v2422_v27  ;;  %2428 = vmatmul.msk.f32.vlgmr.msra.gmra.mxu3 %vm169_vm1, %v2422_v27  ;;  %vm3996_vm5 = vmmov %vm3993_vm2 }
 0x316   :  { %2439 = vmatpush.msk.msra.mxu2 %vm176_vm15, %v1354_v23  ;;  %2442 = vmatpush.msk.msrb.mxu3 %vm176_vm15, %v1355_v24  ;;  %v2447_v23 = vld [vmem:[%s3939_s5 + $0x38] sm:$0xf] }
 0x318   :  { %v2584_v28 = vpop.permute.xlu1 %2583  ;;  %v1450_v29 = vpop.permute.xlu0 %1449 }
 0x319   :  { %v2586_v30 = vunpack.i.h.bf16 %v2584_v28  ;;  %v2585_v31 = vunpack.i.l.bf16 %v2584_v28 }
 0x31a   :  { %v3436_v36 = vpop.permute.xlu2 %1746 }
 0x31b   :  { %v1352_v45 = vsel %vm3986_vm6, %v2585_v31, %v2586_v30  ;;  %v1353_v49 = vsel %vm3987_vm7, %v2586_v30, %v1345_v0  ;;  %v2595_v0 = vunpack.i.l.bf16 %v3422_v16  ;;  %vm3997_vm6 = vmmov %vm3991_vm13  ;;  %v2472_v16 = vld [vmem:[%s3939_s5 + $0x60] sm:$0xff] }
 0x31c   :  { %1383 = vmatpush.msra.mxu2 %v1352_v45  ;;  %1406 = vmatpush.msrb.mxu3 %v1353_v49  ;;  %vm3998_vm7 = vmmov %vm3997_vm6 }
 0x31d   :  { %2426 = vmatmul.msk.f32.gmra.mxu2 %vm169_vm1, %v2423_v50  ;;  %2429 = vmatmul.msk.f32.gmra.mxu3 %vm169_vm1, %v2423_v50  ;;  %v1457_v54 = vsel %vm3995_vm4, %v2595_v0, %v2596_v44 }
 0x320   :  { %v1541_v52 = vpop.permute.xlu1 %1540  ;;  %v1753_v32 = vpop.permute.xlu0 %1752 }
 0x321   :  { %v1546_v56 = vsel %vm545_vm14, %v3388_v34, %v1541_v52  ;;  %v1547_v57 = vsel %vm545_vm14, %v1541_v52, %v1543_v1  ;;  %v2454_v34 = vld [vmem:[%s3939_s5 + $0x40] sm:$0xff]  ;;  %v1458_v1 = vsel %vm3996_vm5, %v2596_v44, %v1450_v29 }
 0x322   :  { %v3448_v43 = vpop.permute.xlu2 %1647  ;;  %2456 = vmatpush.msk.msrb.mxu2 %vm176_vm15, %v1546_v56  ;;  %2459 = vmatpush.msk.msra.mxu3 %vm176_vm15, %v1547_v57  ;;  %v2464_v56 = vld [vmem:[%s3939_s5 + $0x58] sm:$0xf] }
 0x324   :  { %1575 = vmatpush.msrb.mxu2 %v1544_v33  ;;  %1598 = vmatpush.msra.mxu3 %v1545_v61 }
 0x325   :  { %2440 = vmatmul.msk.f32.vlgmr.msra.gmra.mxu2 %vm169_vm1, %v2437_v38  ;;  %2443 = vmatmul.msk.f32.vlgmr.msrb.gmra.mxu3 %vm169_vm1, %v2437_v38 }
 0x328   :  { %v1456_v39 = vpop.permute.xlu1 %1455  ;;  %v3459_v2 = vpop.permute.xlu0 %1643 }
 0x32a   :  { %v3461_v11 = vpop.permute.xlu2 %1958 }
 0x32d   :  { %2441 = vmatmul.msk.f32.gmra.mxu2 %vm169_vm1, %v2438_v48  ;;  %2444 = vmatmul.msk.f32.gmra.mxu3 %vm169_vm1, %v2438_v48  ;;  %v2481_v48 = vld [vmem:[%s3939_s5 + $0x70] sm:$0xff] }
 0x330   :  { %v1248_v60 = vpop.permute.xlu1 %1247  ;;  %v1454_v41 = vpop.permute.xlu0 %1453 }
 0x331   :  { %v1253_v42 = vsel %vm3988_vm10, %v3408_v7, %v1248_v60  ;;  %v1254_v53 = vsel %vm3989_vm11, %v1248_v60, %v3410_v8  ;;  %v1459_v58 = vsel %vm3993_vm2, %v3392_v55, %v1454_v41  ;;  %v1460_v4 = vsel %vm3994_vm3, %v1454_v41, %v1456_v39  ;;  %v1131_v7 = vld [vmem:[%s3939_s5 + $0x8] sm:$0xf]  ;;  %vm3999_vm10 = vmmov %vm3997_vm6  ;;  %v2482_v60 = vld [vmem:[%s3939_s5 + $0x78] sm:$0xf] }
 0x332   :  { %v1751_v40 = vpop.permute.xlu2 %1750  ;;  %2430 = vmatpush.msk.msra.mxu0 %vm176_vm15, %v1253_v42  ;;  %2433 = vmatpush.msk.msra.mxu1 %vm176_vm15, %v1254_v53  ;;  %v2455_v8 = vld [vmem:[%s3939_s5 + $0x48] sm:$0xf]  ;;  %vm4000_vm11 = vcmask 777216  }
 0x333   :  { %v1757_v47 = vsel %vm3991_vm13, %v1751_v40, %v1753_v32  ;;  %vm4001_vm12 = vmmov %vm4000_vm11 }
 0x334   :  { %1282 = vmatpush.msra.mxu0 %v1251_v3  ;;  %1305 = vmatpush.msra.mxu1 %v1252_v59  ;;  %vm4002_vm13 = vmmov %vm4000_vm11  ;;  %v2101_v59 = vld [vmem:[%s3940_s8 + $0xf8] sm:$0xff] }
 0x335   :  { %2477 = vmatpush.msk.msrb.mxu3 %vm176_vm15, %v1757_v47  ;;  %2431 = vmatmul.msk.f32.vlgmr.msra.gmra.mxu0 %vm169_vm1, %v1130_v63  ;;  %vm4003_vm0 = vmmov %vm4000_vm11  ;;  %v2085_v47 = vld [vmem:[%s3940_s8 + $0x78] sm:$0xff] }
 0x336   :  { %2434 = vmatmul.msk.f32.vlgmr.msra.gmra.mxu1 %vm169_vm1, %v1130_v63  ;;  %2448 = vmatpush.msk.msrb.mxu0 %vm176_vm15, %v1459_v58 }
 0x337   :  { %2451 = vmatpush.msk.msrb.mxu1 %vm176_vm15, %v1460_v4  ;;  %2457 = vmatmul.msk.f32.vlgmr.msrb.gmra.mxu2 %vm169_vm1, %v2454_v34 }
 0x338   :  { %1488 = vmatpush.msrb.mxu0 %v1457_v54  ;;  %v1749_v55 = vpop.permute.xlu1 %1748  ;;  %v2604_v5 = vpop.permute.xlu0 %2603  ;;  %2460 = vmatmul.msk.f32.vlgmr.msra.gmra.mxu3 %vm169_vm1, %v2454_v34 }
 0x339   :  { %1511 = vmatpush.msrb.mxu1 %v1458_v1  ;;  %v1756_v6 = vsel %vm3997_vm6, %v1749_v55, %v1751_v40  ;;  %v2606_v26 = vunpack.i.h.bf16 %v2604_v5  ;;  %v2605_v27 = vunpack.i.l.bf16 %v2604_v5  ;;  %v2084_v1 = vld [vmem:[%s3940_s8 + $0x70] sm:$0xff]  ;;  %v2083_v5 = vld [vmem:[%s3940_s8 + $0x68] sm:$0xff] }
 0x33a   :  { %2474 = vmatpush.msk.msra.mxu2 %vm176_vm15, %v1756_v6  ;;  %v2609_v15 = vpop.permute.xlu2 %2608  ;;  %v2100_v55 = vld [vmem:[%s3940_s8 + $0xf0] sm:$0xff]  ;;  %v2099_v6 = vld [vmem:[%s3940_s8 + $0xe8] sm:$0xff] }
 0x33b   :  { %v2611_v17 = vunpack.i.h.bf16 %v2609_v15  ;;  %v2610_v19 = vunpack.i.l.bf16 %v2609_v15  ;;  %v1649_v49 = vsel %vm4002_vm13, %v2605_v27, %v2606_v26 }
 0x33d   :  { %2432 = vmatmul.msk.f32.gmra.mxu0 %vm169_vm1, %v1131_v7  ;;  %v1964_v24 = vsel %vm977_vm8, %v2610_v19, %v2611_v17  ;;  %v2078_v19 = vld [vmem:[%s3940_s8 + $0x40] sm:$0xff] }
 0x33e   :  { %2435 = vmatmul.msk.f32.gmra.mxu1 %vm169_vm1, %v1131_v7  ;;  %v2082_v7 = vld [vmem:[%s3940_s8 + $0x60] sm:$0xff] }
 0x33f   :  { %2458 = vmatmul.msk.f32.gmra.mxu2 %vm169_vm1, %v2455_v8 }
 0x340   :  { %v2599_v9 = vpop.permute.xlu1 %2598  ;;  %v1957_v37 = vpop.permute.xlu0 %1956  ;;  %2461 = vmatmul.msk.f32.gmra.mxu3 %vm169_vm1, %v2455_v8  ;;  %v2098_v8 = vld [vmem:[%s3940_s8 + $0xe0] sm:$0xff] }
 0x341   :  { %v2601_v10 = vunpack.i.h.bf16 %v2599_v9  ;;  %v2600_v12 = vunpack.i.l.bf16 %v2599_v9  ;;  %v1965_v57 = vsel %vm977_vm8, %v2611_v17, %v1957_v37  ;;  %v2081_v9 = vld [vmem:[%s3940_s8 + $0x58] sm:$0xff]  ;;  %v2095_v17 = vld [vmem:[%s3940_s8 + $0xc8] sm:$0xff] }
 0x342   :  { %v1856_v45 = vpop.permute.xlu2 %1855  ;;  %v2097_v37 = vld [vmem:[%s3940_s8 + $0xd8] sm:$0xff] }
 0x343   :  { %v1754_v62 = vsel %vm3998_vm7, %v2600_v12, %v2601_v10  ;;  %v1755_v14 = vsel %vm3999_vm10, %v2601_v10, %v3436_v36  ;;  %v2463_v36 = vld [vmem:[%s3939_s5 + $0x50] sm:$0xff] }
 0x344   :  { %1785 = vmatpush.msra.mxu2 %v1754_v62  ;;  %1808 = vmatpush.msrb.mxu3 %v1755_v14  ;;  %v2096_v62 = vld [vmem:[%s3940_s8 + $0xd0] sm:$0xff] }
 0x345   :  { %2449 = vmatmul.msk.f32.vlgmr.msrb.gmra.mxu0 %vm169_vm1, %v2446_v13 }
 0x346   :  { %2452 = vmatmul.msk.f32.vlgmr.msrb.gmra.mxu1 %vm169_vm1, %v2446_v13  ;;  %v2080_v13 = vld [vmem:[%s3940_s8 + $0x50] sm:$0xff] }
 0x347   :  { %2475 = vmatmul.msk.f32.vlgmr.msra.gmra.mxu2 %vm169_vm1, %v2472_v16 }
 0x348   :  { %v1642_v20 = vpop.permute.xlu1 %1641  ;;  %v1961_v21 = vpop.permute.xlu0 %1960  ;;  %2478 = vmatmul.msk.f32.vlgmr.msrb.gmra.mxu3 %vm169_vm1, %v2472_v16  ;;  %v2079_v16 = vld [vmem:[%s3940_s8 + $0x48] sm:$0xff] }
 0x349   :  { %v1966_v22 = vsel %vm977_vm8, %v3461_v11, %v1961_v21  ;;  %v1650_v50 = vsel %vm4003_vm0, %v2606_v26, %v1642_v20  ;;  %v2094_v20 = vld [vmem:[%s3940_s8 + $0xc0] sm:$0xff]  ;;  %v2092_v26 = vld [vmem:[%s3940_s8 + $0xb0] sm:$0xff] }
 0x34a   :  { %2492 = vmatpush.msk.msrb.mxu2 %vm176_vm15, %v1966_v22  ;;  %v1852_v11 = vpop.permute.xlu2 %1851  ;;  %v2093_v22 = vld [vmem:[%s3940_s8 + $0xb8] sm:$0xff] }
 0x34c   :  { %1995 = vmatpush.msrb.mxu2 %v1964_v24 }
 0x34d   :  { %2450 = vmatmul.msk.f32.gmra.mxu0 %vm169_vm1, %v2447_v23 }
 0x34e   :  { %2453 = vmatmul.msk.f32.gmra.mxu1 %vm169_vm1, %v2447_v23 }
 0x34f   :  { %2476 = vmatmul.msk.f32.gmra.mxu2 %vm169_vm1, %v2473_v25 }
 0x350   :  { %v1646_v28 = vpop.permute.xlu1 %1645  ;;  %2479 = vmatmul.msk.f32.gmra.mxu3 %vm169_vm1, %v2473_v25  ;;  %v1858_v31 = vpop.permute.xlu0 %1857  ;;  %v2076_v25 = vld [vmem:[%s3940_s8 + $0x30] sm:$0xff] }
 0x351   :  { %v1651_v29 = vsel %vm4000_vm11, %v3459_v2, %v1646_v28  ;;  %v1652_v30 = vsel %vm4001_vm12, %v1646_v28, %v3448_v43  ;;  %v1862_v51 = vsel %vm869_vm9, %v1856_v45, %v1858_v31  ;;  %v2491_v43 = vld [vmem:[%s3939_s5 + $0x88] sm:$0xf] }
 0x352   :  { %2465 = vmatpush.msk.msra.mxu0 %vm176_vm15, %v1651_v29  ;;  %2468 = vmatpush.msk.msra.mxu1 %vm176_vm15, %v1652_v30  ;;  %v2075_v29 = vld [vmem:[%s3940_s8 + $0x28] sm:$0xff] }
 0x353   :  { %v2091_v30 = vld [vmem:[%s3940_s8 + $0xa8] sm:$0xff] }
 0x354   :  { %1680 = vmatpush.msra.mxu0 %v1649_v49  ;;  %1703 = vmatpush.msra.mxu1 %v1650_v50  ;;  %v2090_v49 = vld [vmem:[%s3940_s8 + $0xa0] sm:$0xff]  ;;  %v2073_v50 = vld [vmem:[%s3940_s8 + $0x18] sm:$0xff] }
 0x355   :  { %2466 = vmatmul.msk.f32.vlgmr.msra.gmra.mxu0 %vm169_vm1, %v2463_v36 }
 0x356   :  { %2486 = vmatpush.msk.msrb.mxu1 %vm176_vm15, %v1862_v51  ;;  %v2089_v51 = vld [vmem:[%s3940_s8 + $0x98] sm:$0xff] }
 0x357   :  { %2469 = vmatmul.msk.f32.vlgmr.msra.gmra.mxu1 %vm169_vm1, %v2463_v36  ;;  %2493 = vmatmul.msk.f32.vlgmr.msrb.gmra.mxu2 %vm169_vm1, %v2490_v35 }
 0x358   :  { %v1963_v52 = vpop.permute.xlu1 %1962 }
 0x359   :  { %v1967_v32 = vsel %vm977_vm8, %v1961_v21, %v1963_v52  ;;  %v2077_v21 = vld [vmem:[%s3940_s8 + $0x38] sm:$0xff]  ;;  %vm2338_vm8 = vcmask 1024  }
 0x35a   :  { %2495 = vmatpush.msk.msra.mxu3 %vm176_vm15, %v1967_v32  ;;  %v2072_v32 = vld [vmem:[%s3940_s8 + $0x10] sm:$0xff] }
 0x35c   :  { %2018 = vmatpush.msra.mxu3 %v1965_v57 }
 0x35d   :  { %2467 = vmatmul.msk.f32.gmra.mxu0 %vm169_vm1, %v2464_v56  ;;  %2496 = vmatmul.msk.f32.vlgmr.msra.gmra.mxu3 %vm169_vm1, %v2490_v35 }
 0x35f   :  { %2470 = vmatmul.msk.f32.gmra.mxu1 %vm169_vm1, %v2464_v56  ;;  %2494 = vmatmul.msk.f32.gmra.mxu2 %vm169_vm1, %v2491_v43  ;;  %v2088_v56 = vld [vmem:[%s3940_s8 + $0x90] sm:$0xff] }
 0x360   :  { %v1854_v33 = vpop.permute.xlu1 %1853 }
 0x361   :  { %v1861_v61 = vsel %vm869_vm9, %v1854_v33, %v1856_v45  ;;  %v2074_v45 = vld [vmem:[%s3940_s8 + $0x20] sm:$0xff]  ;;  %v2071_v33 = vld [vmem:[%s3940_s8 + $0x8] sm:$0xff] }
 0x362   :  { %2483 = vmatpush.msk.msrb.mxu0 %vm176_vm15, %v1861_v61  ;;  %v2087_v61 = vld [vmem:[%s3940_s8 + $0x88] sm:$0xff] }
 0x365   :  { %2497 = vmatmul.msk.f32.gmra.mxu3 %vm169_vm1, %v2491_v43 }
 0x368   :  { %v2614_v38 = vpop.permute.xlu1 %2613 }
 0x369   :  { %v2616_v39 = vunpack.i.h.bf16 %v2614_v38  ;;  %v2615_v2 = vunpack.i.l.bf16 %v2614_v38  ;;  %v2070_v38 = vld [vmem:[%s3940_s8] sm:$0xff] }
 0x36b   :  { %v1859_v46 = vsel %vm869_vm9, %v2615_v2, %v2616_v39  ;;  %v1860_v18 = vsel %vm869_vm9, %v2616_v39, %v1852_v11  ;;  %v2086_v39 = vld [vmem:[%s3940_s8 + $0x80] sm:$0xff] }
 0x36c   :  { %1890 = vmatpush.msrb.mxu0 %v1859_v46  ;;  %1913 = vmatpush.msrb.mxu1 %v1860_v18 }
 0x36d   :  { %2484 = vmatmul.msk.f32.vlgmr.msrb.gmra.mxu0 %vm169_vm1, %v2481_v48  ;;  %2487 = vmatmul.msk.f32.vlgmr.msrb.gmra.mxu1 %vm169_vm1, %v2481_v48 }
 0x36e   :  { %2102 = vmatpush.msra.mxu0 %v2085_v47  ;;  %2125 = vmatpush.msra.mxu1 %v2101_v59 }
 0x370   :  { %2103 = vmatpush.msra.mxu0 %v2084_v1  ;;  %2126 = vmatpush.msra.mxu1 %v2100_v55 }
 0x372   :  { %2104 = vmatpush.msra.mxu0 %v2083_v5  ;;  %2127 = vmatpush.msra.mxu1 %v2099_v6 }
 0x374   :  { %2105 = vmatpush.msra.mxu0 %v2082_v7  ;;  %2128 = vmatpush.msra.mxu1 %v2098_v8 }
 0x375   :  { %2485 = vmatmul.msk.f32.gmra.mxu0 %vm169_vm1, %v2482_v60  ;;  %2488 = vmatmul.msk.f32.gmra.mxu1 %vm169_vm1, %v2482_v60 }
 0x376   :  { %2106 = vmatpush.msra.mxu0 %v2081_v9  ;;  %2129 = vmatpush.msra.mxu1 %v2097_v37 }
 0x378   :  { %2107 = vmatpush.msra.mxu0 %v2080_v13  ;;  %2130 = vmatpush.msra.mxu1 %v2096_v62 }
 0x37a   :  { %2108 = vmatpush.msra.mxu0 %v2079_v16  ;;  %2131 = vmatpush.msra.mxu1 %v2095_v17  ;;  %v2051_v17 = vpop.permute.xlu1 %2050 }
 0x37c   :  { %2109 = vmatpush.msra.mxu0 %v2078_v19  ;;  %2132 = vmatpush.msra.mxu1 %v2094_v20 }
 0x37e   :  { %2110 = vmatpush.msra.mxu0 %v2077_v21  ;;  %2133 = vmatpush.msra.mxu1 %v2093_v22 }
 0x380   :  { %2111 = vmatpush.msra.mxu0 %v2076_v25  ;;  %2134 = vmatpush.msra.mxu1 %v2092_v26 }
 0x382   :  { %2112 = vmatpush.msra.mxu0 %v2075_v29  ;;  %2135 = vmatpush.msra.mxu1 %v2091_v30  ;;  %v2619_v29 = vld [vmem:[%s3932_s0 + $0x8] sm:$0xff] }
 0x384   :  { %2113 = vmatpush.msra.mxu0 %v2074_v45  ;;  %2136 = vmatpush.msra.mxu1 %v2090_v49 }
 0x386   :  { %2114 = vmatpush.msra.mxu0 %v2073_v50  ;;  %2137 = vmatpush.msra.mxu1 %v2089_v51 }
 0x388   :  { %2115 = vmatpush.msra.mxu0 %v2072_v32  ;;  %2138 = vmatpush.msra.mxu1 %v2088_v56 }
 0x38a   :  { %2116 = vmatpush.msra.mxu0 %v2071_v33  ;;  %2139 = vmatpush.msra.mxu1 %v2087_v61  ;;  %v2620_v33 = vld [vmem:[%s3932_s0 + $0x10] sm:$0xf] }
 0x38c   :  { %2117 = vmatpush.msra.mxu0 %v2070_v38  ;;  %2140 = vmatpush.msra.mxu1 %v2086_v39  ;;  %v2621_v38 = vld [vmem:[%s3932_s0 + $0x18] sm:$0xf] }
 0x398   :  { %v3586_v41 = vpop.f32.mrf.mxu2  ;;  %v3588_v42 = vpop.f32.mrf.mxu3 }
 0x3a0   :  { %v3590_v53 = vpop.f32.mrf.mxu2  ;;  %v3592_v40 = vpop.f32.mrf.mxu3 }
 0x3a8   :  { %v3594_v3 = vpop.f32.mrf.mxu2  ;;  %v3596_v63 = vpop.f32.mrf.mxu3 }
 0x3b0   :  { %v3608_v34 = vpop.f32.mrf.mxu2  ;;  %v3610_v58 = vpop.f32.mrf.mxu3 }
 0x3b2   :  { %v3598_v44 = vpop.f32.mrf.mxu0 }
 0x3b3   :  { %v3600_v0 = vpop.f32.mrf.mxu1  ;;  %v1285_v57 = vadd.f32 %v3598_v44, %v3586_v41 }
 0x3b4   :  { %v1308_v43 = vadd.f32 %v3600_v0, %v3588_v42 }
 0x3b5   :  { %v1414_v2 = vadd.f32 %v3594_v3, %v1285_v57 }
 0x3b6   :  { %v1415_v11 = vadd.f32 %v3596_v63, %v1308_v43 }
 0x3ba   :  { %v3612_v4 = vpop.f32.mrf.mxu0  ;;  %v3640_v10 = vpop.f32.mrf.mxu2 }
 0x3bb   :  { %v3614_v54 = vpop.f32.mrf.mxu1  ;;  %v3642_v12 = vpop.f32.mrf.mxu3  ;;  %v1288_v41 = vadd.f32 %v3612_v4, %v3590_v53 }
 0x3bc   :  { %v1311_v42 = vadd.f32 %v3614_v54, %v3592_v40 }
 0x3bd   :  { %v1416_v47 = vadd.f32 %v3608_v34, %v1288_v41  ;;  %v2193_v41 = vld [vmem:[%s3941_s11 + $0x70] sm:$0xff] }
 0x3be   :  { %v1417_v59 = vadd.f32 %v3610_v58, %v1311_v42  ;;  %v2191_v42 = vld [vmem:[%s3941_s11 + $0x60] sm:$0xff] }
 0x3c2   :  { %v1490_v14 = vpop.f32.mrf.mxu0  ;;  %v3668_v23 = vpop.f32.mrf.mxu2 }
 0x3c3   :  { %v1513_v15 = vpop.f32.mrf.mxu1  ;;  %v3670_v24 = vpop.f32.mrf.mxu3  ;;  %v1519_v48 = vadd.f32 %v1490_v14, %v1414_v2 }
 0x3c4   :  { %v1520_v46 = vadd.f32 %v1513_v15, %v1415_v11  ;;  %v2035_v14 = vpop.permute.xlu0 %2034 }
 0x3c5   :  { %v1606_v3 = vadd.f32 %v3640_v10, %v1519_v48  ;;  %v2201_v48 = vld [vmem:[%s3941_s11 + $0xb0] sm:$0xff] }
 0x3c6   :  { %v1607_v63 = vadd.f32 %v3642_v12, %v1520_v46  ;;  %v2199_v46 = vld [vmem:[%s3941_s11 + $0xa0] sm:$0xff]  ;;  %2216 = vmatpush.msrb.mxu3 %v2201_v48  ;;  %v2280_v48 = vld [vmem:[%s3944_s13 + $0x90] sm:$0xff] }
 0x3c8   :  { %2217 = vmatpush.msrb.mxu3 %v2199_v46  ;;  %v2263_v46 = vld [vmem:[%s3944_s13 + $0x8] sm:$0xff] }
 0x3ca   :  { %v1493_v27 = vpop.f32.mrf.mxu0  ;;  %v1787_v31 = vpop.f32.mrf.mxu2 }
 0x3cb   :  { %v1516_v28 = vpop.f32.mrf.mxu1  ;;  %v1810_v36 = vpop.f32.mrf.mxu3  ;;  %v1521_v5 = vadd.f32 %v1493_v27, %v1416_v47 }
 0x3cc   :  { %v1522_v6 = vadd.f32 %v1516_v28, %v1417_v59  ;;  %v2056_v56 = vpop.permute.xlu0 %2055  ;;  %v2183_v59 = vld [vmem:[%s3941_s11 + $0x20] sm:$0xff] }
 0x3cd   :  { %v1608_v54 = vadd.f32 %v3668_v23, %v1521_v5 }
 0x3ce   :  { %v1609_v37 = vadd.f32 %v3670_v24, %v1522_v6  ;;  %v2618_v24 = vld [vmem:[%s3932_s0] sm:$0xff]  ;;  %v2150_v6 = vld [vmem:[%s3942_s9 + $0x8] sm:$0xf] }
 0x3d2   :  { %v1682_v35 = vpop.f32.mrf.mxu0  ;;  %v1790_v18 = vpop.f32.mrf.mxu2 }
 0x3d3   :  { %v1813_v60 = vpop.f32.mrf.mxu3  ;;  %v1711_v1 = vadd.f32 %v1682_v35, %v1606_v3  ;;  %v2040_v35 = vpop.permute.xlu2 %2039  ;;  %v2185_v3 = vld [vmem:[%s3941_s11 + $0x30] sm:$0xff] }
 0x3d4   :  { %v1705_v52 = vpop.f32.mrf.mxu1 }
 0x3d5   :  { %v1712_v55 = vadd.f32 %v1705_v52, %v1607_v63  ;;  %v1816_v53 = vadd.f32 %v1787_v31, %v1711_v1  ;;  %v2181_v1 = vld [vmem:[%s3941_s11 + $0x10] sm:$0xff] }
 0x3d7   :  { %v1817_v4 = vadd.f32 %v1810_v36, %v1712_v55 }
 0x3da   :  { %v1685_v44 = vpop.f32.mrf.mxu0  ;;  %v1997_v7 = vpop.f32.mrf.mxu2 }
 0x3db   :  { %v1713_v13 = vadd.f32 %v1685_v44, %v1608_v54  ;;  %v2189_v44 = vld [vmem:[%s3941_s11 + $0x50] sm:$0xff]  ;;  %v2202_v54 = vld [vmem:[%s3941_s11 + $0xb8] sm:$0xff] }
 0x3dc   :  { %v1708_v0 = vpop.f32.mrf.mxu1 }
 0x3dd   :  { %v1714_v34 = vadd.f32 %v1708_v0, %v1609_v37  ;;  %v1818_v19 = vadd.f32 %v1790_v18, %v1713_v13  ;;  %v2197_v18 = vld [vmem:[%s3941_s11 + $0x90] sm:$0xff]  ;;  %v2187_v0 = vld [vmem:[%s3941_s11 + $0x40] sm:$0xff]  ;;  %v2200_v37 = vld [vmem:[%s3941_s11 + $0xa8] sm:$0xff] }
 0x3de   :  { %2218 = vmatpush.msrb.mxu3 %v2197_v18  ;;  %v2194_v13 = vld [vmem:[%s3941_s11 + $0x78] sm:$0xff]  ;;  %v2279_v18 = vld [vmem:[%s3944_s13 + $0x88] sm:$0xff] }
 0x3df   :  { %v1819_v20 = vadd.f32 %v1813_v60, %v1714_v34  ;;  %v2195_v60 = vld [vmem:[%s3941_s11 + $0x80] sm:$0xff]  ;;  %v2192_v34 = vld [vmem:[%s3941_s11 + $0x68] sm:$0xff] }
 0x3e0   :  { %v2020_v8 = vpop.f32.mrf.mxu3  ;;  %2219 = vmatpush.msrb.mxu3 %v2195_v60  ;;  %v2262_v60 = vld [vmem:[%s3944_s13] sm:$0xff] }
 0x3e2   :  { %v2000_v25 = vpop.f32.mrf.mxu2  ;;  %2220 = vmatpush.msrb.mxu3 %v2193_v41  ;;  %v2278_v41 = vld [vmem:[%s3944_s13 + $0x80] sm:$0xff] }
 0x3e4   :  { %2221 = vmatpush.msrb.mxu3 %v2191_v42  ;;  %v2203_v42 = vld [vmem:[%s3946_s12] sm:$0x3] }
 0x3e6   :  { %2222 = vmatpush.msrb.mxu3 %v2189_v44  ;;  %v2205_v44 = vperm.slane %v2203_v42, 0 }
 0x3e8   :  { %v2023_v26 = vpop.f32.mrf.mxu3  ;;  %2223 = vmatpush.msrb.mxu3 %v2187_v0  ;;  %v2206_v0 = vperm.slane %v2203_v42, 1 }
 0x3ea   :  { %v1892_v9 = vpop.f32.mrf.mxu0  ;;  %v1915_v40 = vpop.f32.mrf.mxu1  ;;  %2224 = vmatpush.msrb.mxu3 %v2185_v3 }
 0x3eb   :  { %v1921_v10 = vadd.f32 %v1892_v9, %v1816_v53  ;;  %v1922_v12 = vadd.f32 %v1915_v40, %v1817_v4  ;;  %v2149_v53 = vld [vmem:[%s3942_s9] sm:$0xff] }
 0x3ec   :  { %2225 = vmatpush.msrb.mxu3 %v2183_v59  ;;  %v2148_v40 = vld [vmem:[%s3943_s10] sm:$0x3] }
 0x3ed   :  { %v2026_v62 = vadd.f32 %v1997_v7, %v1921_v10  ;;  %v2027_v58 = vadd.f32 %v2020_v8, %v1922_v12  ;;  %v2198_v10 = vld [vmem:[%s3941_s11 + $0x98] sm:$0xff]  ;;  %v2196_v12 = vld [vmem:[%s3941_s11 + $0x88] sm:$0xff] }
 0x3ee   :  { %2226 = vmatpush.msrb.mxu3 %v2181_v1 }
 0x3ef   :  { %v2042_v15 = vmul.f32 %v2035_v14, %v2026_v62  ;;  %v2043_v16 = vmul.f32 %v2035_v14, %v2027_v58  ;;  %v2190_v62 = vld [vmem:[%s3941_s11 + $0x58] sm:$0xff]  ;;  %v2188_v58 = vld [vmem:[%s3941_s11 + $0x48] sm:$0xff]  ;;  %v2179_v14 = vld [vmem:[%s3941_s11] sm:$0xff] }
 0x3f0   :  { %2227 = vmatpush.msrb.mxu3 %v2179_v14 }
 0x3f1   :  { %v2058_v21 = vadd.f32 %v2051_v17, %v2042_v15  ;;  %v2059_v22 = vadd.f32 %v2051_v17, %v2043_v16  ;;  %v2186_v15 = vld [vmem:[%s3941_s11 + $0x38] sm:$0xff]  ;;  %v2184_v16 = vld [vmem:[%s3941_s11 + $0x28] sm:$0xff] }
 0x3f2   :  { %v1895_v27 = vpop.f32.mrf.mxu0  ;;  %v1918_v23 = vpop.f32.mrf.mxu1  ;;  %v2277_v17 = vld [vmem:[%s3944_s13 + $0x78] sm:$0xff] }
 0x3f3   :  { %v2062_v28 = vadd.f32 %v2618_v24, %v2058_v21  ;;  %v2063_v30 = vadd.f32 %v2619_v29, %v2059_v22  ;;  %v1923_v31 = vadd.f32 %v1895_v27, %v1818_v19  ;;  %v1924_v36 = vadd.f32 %v1918_v23, %v1819_v20  ;;  %v2276_v19 = vld [vmem:[%s3944_s13 + $0x70] sm:$0xff]  ;;  %v2182_v20 = vld [vmem:[%s3941_s11 + $0x18] sm:$0xff]  ;;  %2298 = vmatpush.msra.mxu3 %v2277_v17  ;;  %v2275_v22 = vld [vmem:[%s3944_s13 + $0x68] sm:$0xff] }
 0x3f4   :  { %v2293_v21 = vld [vmem:[%s3944_s13 + $0xf8] sm:$0xff]  ;;  %v2291_v27 = vld [vmem:[%s3944_s13 + $0xe8] sm:$0xff]  ;;  %v2274_v23 = vld [vmem:[%s3944_s13 + $0x60] sm:$0xff] }
 0x3f5   :  { %v2066_v45 = vmax.f32 %v2062_v28, 0.0  ;;  %v2067_v49 = vmax.f32 %v2063_v30, 0.0  ;;  %v2028_v50 = vadd.f32 %v2000_v25, %v1923_v31  ;;  %v2029_v51 = vadd.f32 %v2023_v26, %v1924_v36  ;;  %2318 = vmatpush.msrb.mxu0 %v2293_v21  ;;  %v2292_v25 = vld [vmem:[%s3944_s13 + $0xf0] sm:$0xff]  ;;  %v2180_v26 = vld [vmem:[%s3941_s11 + $0x8] sm:$0xff]  ;;  %2299 = vmatpush.msra.mxu3 %v2276_v19  ;;  %v2290_v24 = vld [vmem:[%s3944_s13 + $0xe0] sm:$0xff] }
 0x3f6   :  { %v2273_v28 = vld [vmem:[%s3944_s13 + $0x58] sm:$0xff]  ;;  %v2272_v30 = vld [vmem:[%s3944_s13 + $0x50] sm:$0xff]  ;;  %v2271_v36 = vld [vmem:[%s3944_s13 + $0x48] sm:$0xff] }
 0x3f7   :  { %v2044_v52 = vmul.f32 %v2040_v35, %v2028_v50  ;;  %v2045_v32 = vmul.f32 %v2040_v35, %v2029_v51  ;;  %2118 = vmatmul.f32.vlgmr.msra.gmra.mxu0 %v2066_v45  ;;  %2141 = vmatmul.f32.vlgmr.msra.gmra.mxu1 %v2067_v49  ;;  %v2289_v29 = vld [vmem:[%s3944_s13 + $0xd8] sm:$0xff]  ;;  %v2288_v31 = vld [vmem:[%s3944_s13 + $0xd0] sm:$0xff]  ;;  %v2270_v45 = vld [vmem:[%s3944_s13 + $0x40] sm:$0xff] }
 0x3f8   :  { %2319 = vmatpush.msrb.mxu0 %v2292_v25  ;;  %2300 = vmatpush.msra.mxu3 %v2275_v22  ;;  %v2269_v49 = vld [vmem:[%s3944_s13 + $0x38] sm:$0xff]  ;;  %v2287_v51 = vld [vmem:[%s3944_s13 + $0xc8] sm:$0xff]  ;;  %v2286_v35 = vld [vmem:[%s3944_s13 + $0xc0] sm:$0xff] }
 0x3f9   :  { %v2060_v57 = vadd.f32 %v2056_v56, %v2044_v52  ;;  %v2061_v43 = vadd.f32 %v2056_v56, %v2045_v32  ;;  %v2285_v52 = vld [vmem:[%s3944_s13 + $0xb8] sm:$0xff]  ;;  %v2268_v32 = vld [vmem:[%s3944_s13 + $0x30] sm:$0xff] }
 0x3fa   :  { %2320 = vmatpush.msrb.mxu0 %v2291_v27  ;;  %2301 = vmatpush.msra.mxu3 %v2274_v23  ;;  %v2284_v56 = vld [vmem:[%s3944_s13 + $0xb0] sm:$0xff] }
 0x3fb   :  { %v2064_v61 = vadd.f32 %v2620_v33, %v2060_v57  ;;  %v2065_v39 = vadd.f32 %v2621_v38, %v2061_v43  ;;  %v2267_v57 = vld [vmem:[%s3944_s13 + $0x28] sm:$0xff]  ;;  %v2266_v33 = vld [vmem:[%s3944_s13 + $0x20] sm:$0xff] }
 0x3fc   :  { %2321 = vmatpush.msrb.mxu0 %v2290_v24  ;;  %2302 = vmatpush.msra.mxu3 %v2273_v28  ;;  %v2283_v43 = vld [vmem:[%s3944_s13 + $0xa8] sm:$0xff]  ;;  %v2282_v38 = vld [vmem:[%s3944_s13 + $0xa0] sm:$0xff] }
 0x3fd   :  { %v2068_v2 = vmax.f32 %v2064_v61, 0.0  ;;  %v2069_v11 = vmax.f32 %v2065_v39, 0.0  ;;  %v2265_v61 = vld [vmem:[%s3944_s13 + $0x18] sm:$0xff] }
 0x3fe   :  { %2322 = vmatpush.msrb.mxu0 %v2289_v29  ;;  %2303 = vmatpush.msra.mxu3 %v2272_v30  ;;  %v2281_v39 = vld [vmem:[%s3944_s13 + $0x98] sm:$0xff] }
 0x3ff   :  { %2121 = vmatmul.f32.gmra.mxu0 %v2068_v2  ;;  %2144 = vmatmul.f32.gmra.mxu1 %v2069_v11  ;;  %v20_v2 = vstv %s3945_s14  ;;  %v2264_v11 = vld [vmem:[%s3944_s13 + $0x10] sm:$0xff] }
 0x400   :  { %2323 = vmatpush.msrb.mxu0 %v2288_v31  ;;  %2304 = vmatpush.msra.mxu3 %v2271_v36  ;;  %21 = vst [vmem:[#allocation3] sm:$0x1] %v20_v2 }
 0x402   :  { %2305 = vmatpush.msra.mxu3 %v2270_v45  ;;  %2324 = vmatpush.msrb.mxu0 %v2287_v51 }
 0x404   :  { %2306 = vmatpush.msra.mxu3 %v2269_v49  ;;  %2325 = vmatpush.msrb.mxu0 %v2286_v35 }
 0x406   :  { %2326 = vmatpush.msrb.mxu0 %v2285_v52  ;;  %2307 = vmatpush.msra.mxu3 %v2268_v32 }
 0x408   :  { %2327 = vmatpush.msrb.mxu0 %v2284_v56  ;;  %2308 = vmatpush.msra.mxu3 %v2267_v57 }
 0x40a   :  { %2328 = vmatpush.msrb.mxu0 %v2283_v43  ;;  %2309 = vmatpush.msra.mxu3 %v2266_v33 }
 0x40c   :  { %2329 = vmatpush.msrb.mxu0 %v2282_v38  ;;  %2310 = vmatpush.msra.mxu3 %v2265_v61 }
 0x40e   :  { %2330 = vmatpush.msrb.mxu0 %v2281_v39  ;;  %2311 = vmatpush.msra.mxu3 %v2264_v11 }
 0x410   :  { %2331 = vmatpush.msrb.mxu0 %v2280_v48  ;;  %2312 = vmatpush.msra.mxu3 %v2263_v46 }
 0x412   :  { %2332 = vmatpush.msrb.mxu0 %v2279_v18  ;;  %2313 = vmatpush.msra.mxu3 %v2262_v60 }
 0x414   :  { %2333 = vmatpush.msrb.mxu0 %v2278_v41 }
 0x474   :  { %v2119_v63 = vpop.f32.mrf.mxu0  ;;  %v2142_v47 = vpop.f32.mrf.mxu1 }
 0x475   :  { %v2143_v7 = vadd.f32 %v2142_v47, %v2119_v63 }
 0x477   :  { %v2151_v9 = vmul.f32 %v2149_v53, %v2143_v7 }
 0x47c   :  { %v2122_v55 = vpop.f32.mrf.mxu0  ;;  %v2145_v5 = vpop.f32.mrf.mxu1 }
 0x47d   :  { %v2146_v8 = vadd.f32 %v2145_v5, %v2122_v55 }
 0x47f   :  { %v2152_v4 = vmul.f32 %v2150_v6, %v2146_v8 }
 0x481   :  { %2498 = vmatpush.msk.msra.mxu2 %vm176_vm15, %v2152_v4 }
 0x483   :  { %2174 = vmatpush.msra.mxu2 %v2151_v9 }
 0x484   :  { %2499 = vmatmul.msk.f32.vlgmr.msra.gmra.mxu2 %vm169_vm1, %v2148_v40 }
 0x485   :  { %2236 = vmatpush.msrb.mxu2 %v2202_v54  ;;  %v2617_v54 = vld [vmem:[#allocation3] ss:$0 sm:$0xff] }
 0x487   :  { %2237 = vmatpush.msrb.mxu2 %v2200_v37 }
 0x489   :  { %2238 = vmatpush.msrb.mxu2 %v2198_v10 }
 0x48b   :  { %2239 = vmatpush.msrb.mxu2 %v2196_v12 }
 0x48d   :  { %2240 = vmatpush.msrb.mxu2 %v2194_v13 }
 0x48f   :  { %2241 = vmatpush.msrb.mxu2 %v2192_v34 }
 0x491   :  { %2242 = vmatpush.msrb.mxu2 %v2190_v62 }
 0x493   :  { %2243 = vmatpush.msrb.mxu2 %v2188_v58 }
 0x495   :  { %2244 = vmatpush.msrb.mxu2 %v2186_v15 }
 0x497   :  { %2245 = vmatpush.msrb.mxu2 %v2184_v16 }
 0x499   :  { %2246 = vmatpush.msrb.mxu2 %v2182_v20 }
 0x49b   :  { %2247 = vmatpush.msrb.mxu2 %v2180_v26 }
 0x507   :  { %v2176_v50 = vpop.f32.mrf.mxu2 }
 0x508   :  { %2500 = vmatmul.msk.f32.vlgmr.msrb.gmra.mxu3 %vm545_vm14, %v2176_v50  ;;  %2501 = vmatmul.msk.f32.vlgmr.msrb.gmra.mxu2 %vm545_vm14, %v2176_v50 }
 0x58b   :  { %v2229_v3 = vpop.f32.mrf.mxu3  ;;  %v2249_v63 = vpop.f32.mrf.mxu2 }
 0x58c   :  { %v2230_v47 = vadd.f32 %v2229_v3, %v2205_v44  ;;  %v2250_v59 = vadd.f32 %v2249_v63, %v2206_v0 }
 0x58e   :  { %v2252_v1 = vadd.f32 3.0, %v2230_v47  ;;  %v2253_v55 = vadd.f32 3.0, %v2250_v59 }
 0x590   :  { %v2254_v5 = vmax.f32 %v2252_v1, 0.0  ;;  %v2255_v6 = vmax.f32 %v2253_v55, 0.0 }
 0x592   :  { %v2256_v7 = vmin.f32 %v2254_v5, 6.0  ;;  %v2257_v8 = vmin.f32 %v2255_v6, 6.0 }
 0x594   :  { %v2258_v53 = vmul.f32 %v2256_v7, %v2230_v47  ;;  %v2259_v4 = vmul.f32 %v2257_v8, %v2250_v59 }
 0x596   :  { %v2260_v9 = vmul.f32 0.16666667, %v2258_v53  ;;  %v2261_v40 = vmul.f32 0.16666667, %v2259_v4 }
 0x598   :  { %2314 = vmatmul.f32.vlgmr.msra.gmra.mxu3 %v2260_v9  ;;  %2334 = vmatmul.f32.vlgmr.msrb.gmra.mxu0 %v2261_v40 }
 0x615   :  { %v2335_v12 = vpop.f32.mrf.mxu0 }
 0x61b   :  { %v2315_v37 = vpop.f32.mrf.mxu3 }
 0x61c   :  { %v2316_v10 = vadd.f32 %v2617_v54, %v2315_v37 }
 0x61e   :  { %v2336_v13 = vadd.f32 %v2335_v12, %v2316_v10 }
 0x620   :  { %2339 = vst.msk [vmem:[%s3947_s15] sm:$0x3] %vm2338_vm8, %v2336_v13 }

</bundles_post_ra>
